<compile_context>
chip_gen: v6e
topology: v6e:2x2x1
jax: 0.10.0
libtpu: 0.0.40
codegen_flags: <defaults>
</compile_context>

<pallas_src>
import functools

import jax
import jax.numpy as jnp
import numpy as np
from jax.experimental import pallas as pl
from jax.experimental.pallas import tpu as pltpu

IN_FEATURES = 47      # model input size after one-hot encode + drop column 47
H1 = 47
H2 = 256
IN_PAD = 128          # lane-padded K for fc1
H1_PAD = 128          # lane-padded fc1-out / fc2-in width
TILE_B = 512          # batch tile (512-2048 recommended; 512 chosen for headroom)


def ann_kernel(x_ref, w1_ref, b1_ref, w2_ref, b2_ref, w3_ref, b3_ref, o_ref):
    # fc1 + ReLU  (bf16 MXU matmul, f32 accumulate / bias / ReLU)
    h1 = jnp.dot(x_ref[...], w1_ref[...], preferred_element_type=jnp.float32)
    h1 = jnp.maximum(h1 + b1_ref[...], 0.0)
    # fc2 + ReLU
    h2 = jnp.dot(h1.astype(jnp.bfloat16), w2_ref[...],
                 preferred_element_type=jnp.float32)
    h2 = jnp.maximum(h2 + b2_ref[...], 0.0)            # (TILE_B, 256) f32
    # fc3 (output width 1): VPU multiply + XLU lane-reduce instead of a 1-wide
    # MXU matmul.
    y = jnp.sum(h2 * w3_ref[...], axis=-1, keepdims=True) + b3_ref[...]
    o_ref[...] = y                                      # (TILE_B, 1) f32


@functools.partial(jax.jit, static_argnames=("tile_b",))
def ann_forward(x, packed_params, *, tile_b=TILE_B):
    """x: (B, IN_FEATURES) f32 -> (B, 1) f32."""
    w1, b1, w2, b2, w3, b3 = packed_params
    B, F = x.shape
    b_pad = pl.cdiv(B, tile_b) * tile_b
    # Pad batch to a tile multiple and features to 128 lanes; cast to bf16.
    x_p = jnp.pad(x.astype(jnp.bfloat16),
                  ((0, b_pad - B), (0, IN_PAD - F)))
    grid = (b_pad // tile_b,)

    flops = 2 * b_pad * (IN_PAD * H1_PAD + H1_PAD * H2 + H2)
    bytes_accessed = (
        x_p.size * 2 + w1.size * 2 + w2.size * 2
        + (b1.size + b2.size + w3.size + b3.size) * 4
        + b_pad * 4
    )

    out = pl.pallas_call(
        ann_kernel,
        out_shape=jax.ShapeDtypeStruct((b_pad, 1), jnp.float32),
        grid=grid,
        in_specs=[
            pl.BlockSpec((tile_b, IN_PAD), lambda i: (i, 0)),   # x: streamed
            pl.BlockSpec((IN_PAD, H1_PAD), lambda i: (0, 0)),   # w1: resident
            pl.BlockSpec((1, H1_PAD),      lambda i: (0, 0)),   # b1
            pl.BlockSpec((H1_PAD, H2),     lambda i: (0, 0)),   # w2
            pl.BlockSpec((1, H2),          lambda i: (0, 0)),   # b2
            pl.BlockSpec((1, H2),          lambda i: (0, 0)),   # w3 row vector
            pl.BlockSpec((1, 1),           lambda i: (0, 0)),   # b3
        ],
        out_specs=pl.BlockSpec((tile_b, 1), lambda i: (i, 0)),
        compiler_params=pltpu.CompilerParams(
            dimension_semantics=("parallel",)),                  # 2x on v7x megacore
        cost_estimate=pl.CostEstimate(
            flops=flops, bytes_accessed=bytes_accessed, transcendentals=0),
    )(x_p, w1, b1, w2, b2, w3, b3)
    return out[:B]


def init_linear(key, fan_in, fan_out):
    # Mimics torch.nn.Linear default init: U(-1/sqrt(fan_in), 1/sqrt(fan_in)).
    kw, kb = jax.random.split(key)
    bound = 1.0 / np.sqrt(fan_in)
    w = jax.random.uniform(kw, (fan_in, fan_out), jnp.float32, -bound, bound)
    b = jax.random.uniform(kb, (fan_out,), jnp.float32, -bound, bound)
    return w, b


def make_params(key, input_size=IN_FEATURES):
    k1, k2, k3 = jax.random.split(key, 3)
    w1, b1 = init_linear(k1, input_size, H1)
    w2, b2 = init_linear(k2, H1, H2)
    w3, b3 = init_linear(k3, H2, 1)
    return (w1, b1, w2, b2, w3, b3)


def pack_params(params):
    """Zero-pad the 47-wide dims to 128 and cast matmul weights to bf16."""
    w1, b1, w2, b2, w3, b3 = params
    w1_p = (jnp.zeros((IN_PAD, H1_PAD), jnp.float32)
            .at[: w1.shape[0], : w1.shape[1]].set(w1).astype(jnp.bfloat16))
    b1_p = jnp.zeros((1, H1_PAD), jnp.float32).at[0, : b1.shape[0]].set(b1)
    w2_p = (jnp.zeros((H1_PAD, H2), jnp.float32)
            .at[: w2.shape[0], :].set(w2).astype(jnp.bfloat16))
    b2_p = b2.reshape(1, H2).astype(jnp.float32)
    w3_p = w3.reshape(1, H2).astype(jnp.float32)   # (256,1) -> (1,256) row
    b3_p = b3.reshape(1, 1).astype(jnp.float32)
    return (w1_p, b1_p, w2_p, b2_p, w3_p, b3_p)


def ann_reference_bf16(x, params):
    """Same bf16-input / f32-accumulate arithmetic the kernel uses."""
    w1, b1, w2, b2, w3, b3 = params
    h1 = jnp.dot(x.astype(jnp.bfloat16), w1.astype(jnp.bfloat16),
                 preferred_element_type=jnp.float32) + b1
    h1 = jnp.maximum(h1, 0.0)
    h2 = jnp.dot(h1.astype(jnp.bfloat16), w2.astype(jnp.bfloat16),
                 preferred_element_type=jnp.float32) + b2
    h2 = jnp.maximum(h2, 0.0)
    return h2 @ w3 + b3


def ann_reference_f32(x, params):
    w1, b1, w2, b2, w3, b3 = params
    h1 = jnp.maximum(x @ w1 + b1, 0.0)
    h2 = jnp.maximum(h1 @ w2 + b2, 0.0)
    return h2 @ w3 + b3


if __name__ == "__main__":
    batch = 1000   # non-multiple of TILE_B: exercises batch padding + 2-step grid

    key = jax.random.PRNGKey(0)
    kx, kp = jax.random.split(key)
    x = jax.random.normal(kx, (batch, IN_FEATURES), jnp.float32)
    params = make_params(kp)
    packed = pack_params(params)

    out = ann_forward(x, packed)
    out = jax.block_until_ready(out)
    assert out.shape == (batch, 1)

    # Matches the kernel's bf16-input / f32-accumulate arithmetic tightly.
    ref_bf16 = ann_reference_bf16(x, params)
    np.testing.assert_allclose(np.asarray(out), np.asarray(ref_bf16),
                               rtol=1e-3, atol=1e-3)
    # Sanity check against the pure-f32 PyTorch-equivalent forward.
    ref_f32 = ann_reference_f32(x, params)
    np.testing.assert_allclose(np.asarray(out), np.asarray(ref_f32),
                               rtol=5e-2, atol=5e-2)

    print("KERNEL_OK")
</pallas_src>

<mosaic_0001>
module attributes {stable_mosaic.version = 11 : i64} {
  func.func @ann_kernel(%arg0: i32, %arg1: memref<512x128xbf16, #tpu.memory_space<vmem>>, %arg2: memref<128x128xbf16, #tpu.memory_space<vmem>>, %arg3: memref<1x128xf32, #tpu.memory_space<vmem>>, %arg4: memref<128x256xbf16, #tpu.memory_space<vmem>>, %arg5: memref<1x256xf32, #tpu.memory_space<vmem>>, %arg6: memref<1x256xf32, #tpu.memory_space<vmem>>, %arg7: memref<1x1xf32, #tpu.memory_space<vmem>>, %arg8: memref<512x1xf32, #tpu.memory_space<vmem>>) attributes {dimension_semantics = [#tpu.dimension_semantics<parallel>], iteration_bounds = array<i64: 2>, scalar_prefetch = 0 : i64, scratch_operands = 0 : i64, tpu.core_type = #tpu.core_type<tc>, window_params = [{transform_indices = @transform_0, window_bounds = array<i64: 512, 128>}, {pipeline_mode = #tpu.pipeline_mode<synchronous>, transform_indices = @transform_1, window_bounds = array<i64: 128, 128>}, {pipeline_mode = #tpu.pipeline_mode<synchronous>, transform_indices = @transform_2, window_bounds = array<i64: 1, 128>}, {pipeline_mode = #tpu.pipeline_mode<synchronous>, transform_indices = @transform_3, window_bounds = array<i64: 128, 256>}, {pipeline_mode = #tpu.pipeline_mode<synchronous>, transform_indices = @transform_4, window_bounds = array<i64: 1, 256>}, {pipeline_mode = #tpu.pipeline_mode<synchronous>, transform_indices = @transform_5, window_bounds = array<i64: 1, 256>}, {pipeline_mode = #tpu.pipeline_mode<synchronous>, transform_indices = @transform_6, window_bounds = array<i64: 1, 1>}, {transform_indices = @transform_7, window_bounds = array<i64: 512, 1>}]} {
    %c0 = arith.constant 0 : index
    %c0_0 = arith.constant 0 : index
    %0 = vector.load %arg1[%c0, %c0_0] : memref<512x128xbf16, #tpu.memory_space<vmem>>, vector<512x128xbf16>
    %c0_1 = arith.constant 0 : index
    %c0_2 = arith.constant 0 : index
    %1 = vector.load %arg2[%c0_1, %c0_2] : memref<128x128xbf16, #tpu.memory_space<vmem>>, vector<128x128xbf16>
    %cst = arith.constant dense<0.000000e+00> : vector<512x128xf32>
    %2 = tpu.matmul %0, %1, %cst {dimension_numbers = #tpu.dot_dimension_numbers<[1], [0], [0], [1], [0, 0, 1, 1], [], []>} : vector<512x128xbf16>, vector<128x128xbf16>, vector<512x128xf32> -> vector<512x128xf32>
    %c0_3 = arith.constant 0 : index
    %c0_4 = arith.constant 0 : index
    %3 = vector.load %arg3[%c0_3, %c0_4] : memref<1x128xf32, #tpu.memory_space<vmem>>, vector<1x128xf32>
    %4 = vector.broadcast %3 : vector<1x128xf32> to vector<512x128xf32>
    %5 = arith.addf %2, %4 : vector<512x128xf32>
    %cst_5 = arith.constant 0.000000e+00 : f32
    %6 = vector.broadcast %cst_5 : f32 to vector<512x128xf32>
    %7 = arith.maximumf %5, %6 : vector<512x128xf32>
    %8 = arith.truncf %7 : vector<512x128xf32> to vector<512x128xbf16>
    %c0_6 = arith.constant 0 : index
    %c0_7 = arith.constant 0 : index
    %9 = vector.load %arg4[%c0_6, %c0_7] : memref<128x256xbf16, #tpu.memory_space<vmem>>, vector<128x256xbf16>
    %cst_8 = arith.constant dense<0.000000e+00> : vector<512x256xf32>
    %10 = tpu.matmul %8, %9, %cst_8 {dimension_numbers = #tpu.dot_dimension_numbers<[1], [0], [0], [1], [0, 0, 1, 1], [], []>} : vector<512x128xbf16>, vector<128x256xbf16>, vector<512x256xf32> -> vector<512x256xf32>
    %c0_9 = arith.constant 0 : index
    %c0_10 = arith.constant 0 : index
    %11 = vector.load %arg5[%c0_9, %c0_10] : memref<1x256xf32, #tpu.memory_space<vmem>>, vector<1x256xf32>
    %12 = vector.broadcast %11 : vector<1x256xf32> to vector<512x256xf32>
    %13 = arith.addf %10, %12 : vector<512x256xf32>
    %cst_11 = arith.constant 0.000000e+00 : f32
    %14 = vector.broadcast %cst_11 : f32 to vector<512x256xf32>
    %15 = arith.maximumf %13, %14 : vector<512x256xf32>
    %c0_12 = arith.constant 0 : index
    %c0_13 = arith.constant 0 : index
    %16 = vector.load %arg6[%c0_12, %c0_13] : memref<1x256xf32, #tpu.memory_space<vmem>>, vector<1x256xf32>
    %17 = vector.broadcast %16 : vector<1x256xf32> to vector<512x256xf32>
    %18 = arith.mulf %15, %17 : vector<512x256xf32>
    %cst_14 = arith.constant dense<0.000000e+00> : vector<512xf32>
    %19 = vector.multi_reduction <add>, %18, %cst_14 [1] : vector<512x256xf32> to vector<512xf32>
    %20 = vector.shape_cast %19 : vector<512xf32> to vector<512x1xf32>
    %c0_15 = arith.constant 0 : index
    %c0_16 = arith.constant 0 : index
    %21 = vector.load %arg7[%c0_15, %c0_16] : memref<1x1xf32, #tpu.memory_space<vmem>>, vector<1x1xf32>
    %22 = vector.broadcast %21 : vector<1x1xf32> to vector<512x1xf32>
    %23 = arith.addf %20, %22 : vector<512x1xf32>
    %c0_17 = arith.constant 0 : index
    %c0_18 = arith.constant 0 : index
    %24 = vector.load %arg8[%c0_17, %c0_18] : memref<512x1xf32, #tpu.memory_space<vmem>>, vector<512x1xf32>
    tpu.vector_store %arg8[%c0_17, %c0_18], %23 {strides = array<i32>} : memref<512x1xf32, #tpu.memory_space<vmem>>, vector<512x1xf32>,
    return
  }
  func.func @transform_0(%arg0: i32) -> (i32, i32) {
    %c0_i32 = arith.constant 0 : i32
    %c0_i32_0 = arith.constant 0 : i32
    return %arg0, %c0_i32 : i32, i32
  }
  func.func @transform_1(%arg0: i32) -> (i32, i32) {
    %c0_i32 = arith.constant 0 : i32
    %c0_i32_0 = arith.constant 0 : i32
    %c0_i32_1 = arith.constant 0 : i32
    return %c0_i32, %c0_i32_0 : i32, i32
  }
  func.func @transform_2(%arg0: i32) -> (i32, i32) {
    %c0_i32 = arith.constant 0 : i32
    %c0_i32_0 = arith.constant 0 : i32
    %c0_i32_1 = arith.constant 0 : i32
    return %c0_i32, %c0_i32_0 : i32, i32
  }
  func.func @transform_3(%arg0: i32) -> (i32, i32) {
    %c0_i32 = arith.constant 0 : i32
    %c0_i32_0 = arith.constant 0 : i32
    %c0_i32_1 = arith.constant 0 : i32
    return %c0_i32, %c0_i32_0 : i32, i32
  }
  func.func @transform_4(%arg0: i32) -> (i32, i32) {
    %c0_i32 = arith.constant 0 : i32
    %c0_i32_0 = arith.constant 0 : i32
    %c0_i32_1 = arith.constant 0 : i32
    return %c0_i32, %c0_i32_0 : i32, i32
  }
  func.func @transform_5(%arg0: i32) -> (i32, i32) {
    %c0_i32 = arith.constant 0 : i32
    %c0_i32_0 = arith.constant 0 : i32
    %c0_i32_1 = arith.constant 0 : i32
    return %c0_i32, %c0_i32_0 : i32, i32
  }
  func.func @transform_6(%arg0: i32) -> (i32, i32) {
    %c0_i32 = arith.constant 0 : i32
    %c0_i32_0 = arith.constant 0 : i32
    %c0_i32_1 = arith.constant 0 : i32
    return %c0_i32, %c0_i32_0 : i32, i32
  }
  func.func @transform_7(%arg0: i32) -> (i32, i32) {
    %c0_i32 = arith.constant 0 : i32
    %c0_i32_0 = arith.constant 0 : i32
    return %arg0, %c0_i32 : i32, i32
  }
}

</mosaic_0001>

<bundles_post_ra>
// kernel: ann_forward.1
= control target key start
LH: loop header
LB: loop body
LE: loop exit
PB: predicated region body
PF: predicated region fallthrough
CT: control target
= control target key end

     0   :  { %s2440_s26 = smov 0   ;;  %s3140_s0 = inlined_call_operand.vmem [shape: bf16[1024,128], index: 0, kind: input, shape index: {}]   ;;  %s3141_s1 = inlined_call_operand.vmem [shape: bf16[128,128], index: 1, kind: input, shape index: {}]   ;;  %s3142_s2 = inlined_call_operand.vmem [shape: f32[1,128], index: 2, kind: input, shape index: {}]   ;;  %s3143_s3 = inlined_call_operand.vmem [shape: bf16[128,256], index: 3, kind: input, shape index: {}]   ;;  %s3144_s4 = inlined_call_operand.vmem [shape: f32[1,256], index: 4, kind: input, shape index: {}]   ;;  %s3145_s5 = inlined_call_operand.vmem [shape: f32[1,256], index: 5, kind: input, shape index: {}]   ;;  %s3146_s6 = inlined_call_operand.<no memory space> [shape: f32[1,1], index: 6, kind: input, shape index: {}]   ;;  %s3147_s7 = inlined_call_operand.vmem [shape: f32[1024,1], index: 7, kind: output, shape index: {}]  }
   0x1   :  { %v12_v0 = vstv %s3146_s6 }
   0x2   :  { %13 = vst [vmem:[#allocation2] sm:$0x1] %v12_v0 }
   0x3 LB: > { %s2110_s27 = sadd.s32 4294967295, %s2394_s26   ;;  %p2114_p0 = scmp.ge.s32.totalorder %s2394_s26, 1  ;;  %s2394_s26 = sphi %s2440_s26, %s19_s26  }
   0x4   : > { %p240_p1 = scmp.lt.s32.totalorder %s2394_s26, 3 }
   0x6   : > { %p241_p2 = pnand %p2114_p0, %p240_p1 }
   0x7   : > { %s2115_s6 = sshll.u32 (!%p241_p2), %s2110_s27, 6 }
   0x8   : > { %244 = sbr.rel (%p241_p2) target bundleno = 815 (0x32f), region = 48  ;;  %p273_p3 = scmp.lt.s32.totalorder (!%p241_p2), %s2115_s6, 127 }
   0xd   : > { %v2324_v1 = vld [vmem:[%s3141_s1 + $0x38] sm:$0xff]   ;;  %v2325_v2 = vld [vmem:[%s3141_s1 + $0x30] sm:$0xff]   ;;  %s3149_s6 = smov (!%p273_p3, %s2115_s6), 127  ;;  %v2326_v3 = vld [vmem:[%s3141_s1 + $0x28] sm:$0xff]   ;;  %v2396_v47 = vmov 0   ;;  %vm1989_vm0 = vcmask 7168  }
   0xe   : > { %2219 = vmatprep.subr.bf16.mxu0 %v2324_v1  ;;  %s2116_s11 = sshll.u32 %s3149_s6, 2  ;;  %v2327_v4 = vld [vmem:[%s3141_s1 + $0x20] sm:$0xff]   ;;  %v2328_v6 = vld [vmem:[%s3141_s1 + $0x18] sm:$0xff]   ;;  %v2329_v7 = vld [vmem:[%s3141_s1 + $0x10] sm:$0xff]   ;;  %1217 = vmatprep.mubr.bf16.mxu1 %v2396_v47  ;;  %s2118_s20 = sshll.u32 %s3149_s6, 3 }
   0xf   : > { %2220 = vmatpush3.bf16.msra.mxu0 %v2324_v1  ;;  %s2463_s14 = scalar_lea.vmem %s3140_s0, %s2116_s11  ;;  %v2330_v8 = vld [vmem:[%s3141_s1 + $0x8] sm:$0xff]   ;;  %v2331_v9 = vld [vmem:[%s3141_s1] sm:$0xff]   ;;  %v2356_v12 = vld [vmem:[%s3143_s3 + $0x70] ss:$8 sps:$4 sm:$0xff]   ;;  %s2865_s23 = scalar_lea.vmem %s3147_s7, %s2118_s20 }
  0x10   : > { %2221 = vmatprep.subr.bf16.mxu0 %v2325_v2  ;;  %v2332_v5 = vld [vmem:[%s2463_s14] sm:$0xff]   ;;  %v2333_v10 = vld [vmem:[%s2463_s14 + $0x8] sm:$0xff]   ;;  %v2334_v11 = vld [vmem:[%s2463_s14 + $0x10] sm:$0xff]  }
  0x11   : > { %2235 = vmatprep.mubr.bf16.mxu0 %v2332_v5  ;;  %v2358_v13 = vld [vmem:[%s3143_s3 + $0x74] ss:$8 sps:$4 sm:$0xff]   ;;  %v2361_v14 = vld [vmem:[%s3143_s3 + $0x60] ss:$8 sps:$4 sm:$0xff]   ;;  %v2363_v15 = vld [vmem:[%s3143_s3 + $0x64] ss:$8 sps:$4 sm:$0xff]  }
  0x12   : > { %2299 = vmatprep.subr.bf16.mxu1 %v2358_v13  ;;  %v2335_v16 = vld [vmem:[%s2463_s14 + $0x18] sm:$0xff]   ;;  %v2336_v17 = vld [vmem:[%s2463_s14 + $0x20] sm:$0xff]   ;;  %v2337_v21 = vld [vmem:[%s2463_s14 + $0x28] sm:$0xff]  }
  0x13   : > { %2222 = vmatpush3.bf16.msra.mxu0 %v2325_v2  ;;  %2307 = vmatpush1.bf16.msra.mxu1 %v2356_v12  ;;  %v2368_v18 = vld [vmem:[%s3143_s3 + $0x54] ss:$8 sps:$4 sm:$0xff]   ;;  %v2366_v19 = vld [vmem:[%s3143_s3 + $0x50] ss:$8 sps:$4 sm:$0xff]   ;;  %v2372_v20 = vld [vmem:[%s3143_s3 + $0x44] ss:$8 sps:$4 sm:$0xff]  }
  0x14   : > { %2223 = vmatprep.subr.bf16.mxu0 %v2326_v3  ;;  %2300 = vmatprep.subr.bf16.mxu1 %v2363_v15  ;;  %v2370_v22 = vld [vmem:[%s3143_s3 + $0x40] ss:$8 sps:$4 sm:$0xff]   ;;  %v2376_v23 = vld [vmem:[%s3143_s3 + $0x34] ss:$8 sps:$4 sm:$0xff]   ;;  %v2374_v25 = vld [vmem:[%s3143_s3 + $0x30] ss:$8 sps:$4 sm:$0xff]  }
  0x15   : > { %v2338_v24 = vld [vmem:[%s2463_s14 + $0x30] sm:$0xff]   ;;  %v2339_v26 = vld [vmem:[%s2463_s14 + $0x38] sm:$0xff]   ;;  %v2340_v27 = vld [vmem:[%s2463_s14 + $0x40] sm:$0xff]  }
  0x16   : > { %v2341_v28 = vld [vmem:[%s2463_s14 + $0x48] sm:$0xff]   ;;  %v2342_v29 = vld [vmem:[%s2463_s14 + $0x50] sm:$0xff]   ;;  %v2343_v30 = vld [vmem:[%s2463_s14 + $0x58] sm:$0xff]  }
  0x17   : > { %2224 = vmatpush3.bf16.msra.mxu0 %v2326_v3  ;;  %2308 = vmatpush1.bf16.msra.mxu1 %v2361_v14  ;;  %v2344_v31 = vld [vmem:[%s2463_s14 + $0x60] sm:$0xff]   ;;  %v2345_v32 = vld [vmem:[%s2463_s14 + $0x68] sm:$0xff]   ;;  %v2346_v33 = vld [vmem:[%s2463_s14 + $0x70] sm:$0xff]  }
  0x18   : > { %2225 = vmatprep.subr.bf16.mxu0 %v2327_v4  ;;  %2301 = vmatprep.subr.bf16.mxu1 %v2368_v18  ;;  %v2347_v34 = vld [vmem:[%s2463_s14 + $0x78] sm:$0xff]   ;;  %v2348_v35 = vld [vmem:[%s2463_s14 + $0x80] sm:$0xff]   ;;  %v2349_v36 = vld [vmem:[%s2463_s14 + $0x88] sm:$0xff]  }
  0x19   : > { %v2350_v37 = vld [vmem:[%s2463_s14 + $0x90] sm:$0xff]   ;;  %v2379_v38 = vld [vmem:[%s3143_s3 + $0x24] ss:$8 sps:$4 sm:$0xff]   ;;  %v2377_v39 = vld [vmem:[%s3143_s3 + $0x20] ss:$8 sps:$4 sm:$0xff]  }
  0x1a   : > { %v2384_v40 = vld [vmem:[%s3143_s3 + $0x14] ss:$8 sps:$4 sm:$0xff]   ;;  %v2382_v42 = vld [vmem:[%s3143_s3 + $0x10] ss:$8 sps:$4 sm:$0xff]   ;;  %v2352_v43 = vld [vmem:[%s2463_s14 + $0xa0] sm:$0xff]  }
  0x1b   : > { %2226 = vmatpush3.bf16.msra.mxu0 %v2327_v4  ;;  %2309 = vmatpush1.bf16.msra.mxu1 %v2366_v19  ;;  %v2351_v41 = vld [vmem:[%s2463_s14 + $0x98] sm:$0xff]   ;;  %v2387_v44 = vld [vmem:[%s3143_s3 + $0x4] ss:$8 sps:$4 sm:$0xff]   ;;  %v2385_v45 = vld [vmem:[%s3143_s3] ss:$8 sps:$4 sm:$0xff]  }
  0x1c   : > { %2227 = vmatprep.subr.bf16.mxu0 %v2328_v6  ;;  %2302 = vmatprep.subr.bf16.mxu1 %v2372_v20  ;;  %v2353_v46 = vld [vmem:[%s2463_s14 + $0xa8] sm:$0xff]   ;;  %v2354_v48 = vld [vmem:[%s2463_s14 + $0xb0] sm:$0xff]   ;;  %v2355_v49 = vld [vmem:[%s2463_s14 + $0xb8] sm:$0xff]  }
  0x1d   : > { %v2359_v50 = vld [vmem:[%s2463_s14 + $0xc0] sm:$0xff]   ;;  %v2360_v51 = vld [vmem:[%s2463_s14 + $0xc8] sm:$0xff]   ;;  %v2364_v52 = vld [vmem:[%s2463_s14 + $0xd0] sm:$0xff]  }
  0x1e   : > { %v2365_v53 = vld [vmem:[%s2463_s14 + $0xd8] sm:$0xff]   ;;  %v2369_v54 = vld [vmem:[%s2463_s14 + $0xe0] sm:$0xff]   ;;  %v2373_v55 = vld [vmem:[%s2463_s14 + $0xe8] sm:$0xff]  }
  0x1f   : > { %2228 = vmatpush3.bf16.msra.mxu0 %v2328_v6  ;;  %2310 = vmatpush1.bf16.msra.mxu1 %v2370_v22  ;;  %v2380_v56 = vld [vmem:[%s2463_s14 + $0xf0] sm:$0xff]   ;;  %v2381_v57 = vld [vmem:[%s2463_s14 + $0xf8] sm:$0xff]   ;;  %v2565_v60 = vld [vmem:[%s3142_s2] ss:$0 sm:$0xff] }
  0x20   : > { %2229 = vmatprep.subr.bf16.mxu0 %v2329_v7  ;;  %2303 = vmatprep.subr.bf16.mxu1 %v2376_v23 }
  0x23   : > { %2230 = vmatpush3.bf16.msra.mxu0 %v2329_v7  ;;  %2311 = vmatpush1.bf16.msra.mxu1 %v2374_v25 }
  0x24   : > { %2231 = vmatprep.subr.bf16.mxu0 %v2330_v8  ;;  %2304 = vmatprep.subr.bf16.mxu1 %v2379_v38 }
  0x27   : > { %2232 = vmatpush3.bf16.msra.mxu0 %v2330_v8  ;;  %2312 = vmatpush1.bf16.msra.mxu1 %v2377_v39 }
  0x28   : > { %2233 = vmatprep.subr.bf16.mxu0 %v2331_v9  ;;  %2305 = vmatprep.subr.bf16.mxu1 %v2384_v40 }
  0x2b   : > { %2234 = vmatpush3.bf16.msra.mxu0 %v2331_v9  ;;  %2313 = vmatpush1.bf16.msra.mxu1 %v2382_v42 }
  0x2c   : > { %1105 = vmatprep.subr.bf16.mxu0 %v2358_v13  ;;  %2306 = vmatprep.subr.bf16.mxu1 %v2387_v44 }
  0x2e   : > { %2236 = vmatmul.mubr.bf16.vlgmr.msra.gmra.mxu0 %v2333_v10 }
  0x2f   : > { %2239 = vmatprep.mubr.bf16.mxu0 %v2334_v11  ;;  %1106 = vmatpush1.bf16.msra.mxu0 %v2356_v12 }
  0x30   : > { %1107 = vmatprep.subr.bf16.mxu0 %v2363_v15  ;;  %2314 = vmatpush1.bf16.msra.mxu1 %v2385_v45 }
  0x33   : > { %1108 = vmatpush1.bf16.msra.mxu0 %v2361_v14 }
  0x34   : > { %1109 = vmatprep.subr.bf16.mxu0 %v2368_v18 }
  0x36   : > { %2240 = vmatmul.mubr.bf16.gmra.mxu0 %v2335_v16 }
  0x37   : > { %2243 = vmatprep.mubr.bf16.mxu0 %v2336_v17  ;;  %1110 = vmatpush1.bf16.msra.mxu0 %v2366_v19 }
  0x38   : > { %1111 = vmatprep.subr.bf16.mxu0 %v2372_v20 }
  0x3b   : > { %1112 = vmatpush1.bf16.msra.mxu0 %v2370_v22 }
  0x3c   : > { %1113 = vmatprep.subr.bf16.mxu0 %v2376_v23 }
  0x3e   : > { %2244 = vmatmul.mubr.bf16.gmra.mxu0 %v2337_v21 }
  0x3f   : > { %2247 = vmatprep.mubr.bf16.mxu0 %v2338_v24  ;;  %1114 = vmatpush1.bf16.msra.mxu0 %v2374_v25 }
  0x40   : > { %1115 = vmatprep.subr.bf16.mxu0 %v2379_v38 }
  0x43   : > { %1116 = vmatpush1.bf16.msra.mxu0 %v2377_v39 }
  0x44   : > { %1117 = vmatprep.subr.bf16.mxu0 %v2384_v40 }
  0x46   : > { %2248 = vmatmul.mubr.bf16.gmra.mxu0 %v2339_v26 }
  0x47   : > { %2251 = vmatprep.mubr.bf16.mxu0 %v2340_v27  ;;  %1118 = vmatpush1.bf16.msra.mxu0 %v2382_v42 }
  0x48   : > { %1119 = vmatprep.subr.bf16.mxu0 %v2387_v44 }
  0x4b   : > { %1120 = vmatpush1.bf16.msra.mxu0 %v2385_v45 }
  0x4e   : > { %2252 = vmatmul.mubr.bf16.gmra.mxu0 %v2341_v28 }
  0x4f   : > { %2255 = vmatprep.mubr.bf16.mxu0 %v2342_v29 }
  0x56   : > { %2256 = vmatmul.mubr.bf16.gmra.mxu0 %v2343_v30 }
  0x57   : > { %2259 = vmatprep.mubr.bf16.mxu0 %v2344_v31 }
  0x5e   : > { %2260 = vmatmul.mubr.bf16.gmra.mxu0 %v2345_v32 }
  0x5f   : > { %2263 = vmatprep.mubr.bf16.mxu0 %v2346_v33 }
  0x66   : > { %2264 = vmatmul.mubr.bf16.gmra.mxu0 %v2347_v34 }
  0x67   : > { %2267 = vmatprep.mubr.bf16.mxu0 %v2348_v35 }
  0x6e   : > { %2268 = vmatmul.mubr.bf16.gmra.mxu0 %v2349_v36 }
  0x6f   : > { %2271 = vmatprep.mubr.bf16.mxu0 %v2350_v37 }
  0x76   : > { %2272 = vmatmul.mubr.bf16.gmra.mxu0 %v2351_v41 }
  0x77   : > { %2275 = vmatprep.mubr.bf16.mxu0 %v2352_v43 }
  0x7e   : > { %2276 = vmatmul.mubr.bf16.gmra.mxu0 %v2353_v46 }
  0x7f   : > { %2279 = vmatprep.mubr.bf16.mxu0 %v2354_v48 }
  0x86   : > { %2280 = vmatmul.mubr.bf16.gmra.mxu0 %v2355_v49 }
  0x87   : > { %2283 = vmatprep.mubr.bf16.mxu0 %v2359_v50 }
  0x8e   : > { %2284 = vmatmul.mubr.bf16.gmra.mxu0 %v2360_v51 }
  0x8f   : > { %2287 = vmatprep.mubr.bf16.mxu0 %v2364_v52 }
  0x96   : > { %2288 = vmatmul.mubr.bf16.gmra.mxu0 %v2365_v53 }
  0x97   : > { %2291 = vmatprep.mubr.bf16.mxu0 %v2369_v54 }
  0x9e   : > { %2292 = vmatmul.mubr.bf16.gmra.mxu0 %v2373_v55 }
  0x9f   : > { %2295 = vmatprep.mubr.bf16.mxu0 %v2380_v56 }
  0xa6   : > { %2296 = vmatmul.mubr.bf16.gmra.mxu0 %v2381_v57 }
  0xa7   : > { %1137 = vmatprep.mubr.bf16.mxu0 %v2396_v47 }
  0xee   : > { %v2237_v58 = vpop.f32.mrf.mxu0 }
  0xef   : > { %v655_v8 = vadd.f32 %v2237_v58, %v2565_v60 }
  0xf0   : > { %v646_v59 = vpop.f32.mrf.mxu0 }
  0xf1   : > { %v647_v62 = vadd.f32 %v2565_v60, %v646_v59  ;;  %v903_v12 = vmax.f32 %v655_v8, 0.0 }
  0xf2   : > { %v2238_v61 = vpop.f32.mrf.mxu0 }
  0xf3   : > { %v901_v2 = vmax.f32 %v647_v62, 0.0  ;;  %v658_v5 = vadd.f32 %v2238_v61, %v2565_v60 }
  0xf4   : > { %v649_v63 = vpop.f32.mrf.mxu0 }
  0xf5   : > { %v650_v0 = vadd.f32 %v2565_v60, %v649_v63  ;;  %v904_v10 = vmax.f32 %v658_v5, 0.0 }
  0xf6   : > { %v2241_v1 = vpop.f32.mrf.mxu0 }
  0xf7   : > { %v902_v3 = vmax.f32 %v650_v0, 0.0  ;;  %v966_v14 = vpack.c.bf16 %v904_v10, %v903_v12  ;;  %v671_v26 = vadd.f32 %v2241_v1, %v2565_v60 }
  0xf8   : > { %v662_v4 = vpop.f32.mrf.mxu0 }
  0xf9   : > { %v965_v6 = vpack.c.bf16 %v902_v3, %v901_v2  ;;  %v663_v17 = vadd.f32 %v2565_v60, %v662_v4  ;;  %v907_v30 = vmax.f32 %v671_v26, 0.0 }
  0xfa   : > { %v2242_v7 = vpop.f32.mrf.mxu0 }
  0xfb   : > { %1138 = vmatmul.mubr.bf16.vlgmr.msra.gmra.mxu0 %v965_v6  ;;  %v905_v21 = vmax.f32 %v663_v17, 0.0  ;;  %v674_v23 = vadd.f32 %v2242_v7, %v2565_v60 }
  0xfc   : > { %v665_v9 = vpop.f32.mrf.mxu0  ;;  %1147 = vmatprep.mubr.bf16.mxu0 %v2396_v47 }
  0xfd   : > { %v666_v15 = vadd.f32 %v2565_v60, %v665_v9  ;;  %v908_v28 = vmax.f32 %v674_v23, 0.0 }
  0xfe   : > { %v2245_v11 = vpop.f32.mrf.mxu0 }
  0xff   : > { %v906_v19 = vmax.f32 %v666_v15, 0.0  ;;  %v968_v32 = vpack.c.bf16 %v908_v28, %v907_v30  ;;  %v687_v50 = vadd.f32 %v2245_v11, %v2565_v60 }
 0x100   : > { %v678_v13 = vpop.f32.mrf.mxu0 }
 0x101   : > { %v967_v24 = vpack.c.bf16 %v906_v19, %v905_v21  ;;  %v679_v35 = vadd.f32 %v2565_v60, %v678_v13  ;;  %v911_v55 = vmax.f32 %v687_v50, 0.0 }
 0x102   : > { %v2246_v16 = vpop.f32.mrf.mxu0 }
 0x103   : > { %1148 = vmatmul.mubr.bf16.gmra.mxu0 %v966_v14  ;;  %v909_v41 = vmax.f32 %v679_v35, 0.0  ;;  %v690_v44 = vadd.f32 %v2246_v16, %v2565_v60 }
 0x104   : > { %v681_v18 = vpop.f32.mrf.mxu0  ;;  %1157 = vmatprep.mubr.bf16.mxu0 %v2396_v47 }
 0x105   : > { %v682_v33 = vadd.f32 %v2565_v60, %v681_v18  ;;  %v912_v53 = vmax.f32 %v690_v44, 0.0 }
 0x106   : > { %v2575_v20 = vpop.f32.mrf.mxu0 }
 0x107   : > { %v910_v38 = vmax.f32 %v682_v33, 0.0  ;;  %v970_v58 = vpack.c.bf16 %v912_v53, %v911_v55  ;;  %v703_v13 = vadd.f32 %v2575_v20, %v2565_v60 }
 0x108   : > { %v694_v22 = vpop.f32.mrf.mxu0 }
 0x109   : > { %v969_v46 = vpack.c.bf16 %v910_v38, %v909_v41  ;;  %v695_v1 = vadd.f32 %v2565_v60, %v694_v22  ;;  %v915_v18 = vmax.f32 %v703_v13, 0.0 }
 0x10a   : > { %v2250_v25 = vpop.f32.mrf.mxu0 }
 0x10b   : > { %1158 = vmatmul.mubr.bf16.gmra.mxu0 %v967_v24  ;;  %v913_v6 = vmax.f32 %v695_v1, 0.0  ;;  %v706_v7 = vadd.f32 %v2250_v25, %v2565_v60 }
 0x10c   : > { %v697_v27 = vpop.f32.mrf.mxu0  ;;  %1167 = vmatprep.mubr.bf16.mxu0 %v2396_v47 }
 0x10d   : > { %v698_v59 = vadd.f32 %v2565_v60, %v697_v27  ;;  %v916_v14 = vmax.f32 %v706_v7, 0.0 }
 0x10e   : > { %v2253_v29 = vpop.f32.mrf.mxu0 }
 0x10f   : > { %v719_v52 = vadd.f32 %v2253_v29, %v2565_v60  ;;  %v914_v2 = vmax.f32 %v698_v59, 0.0  ;;  %v972_v19 = vpack.c.bf16 %v916_v14, %v915_v18 }
 0x110   : > { %v710_v31 = vpop.f32.mrf.mxu0 }
 0x111   : > { %v711_v36 = vadd.f32 %v2565_v60, %v710_v31  ;;  %v919_v57 = vmax.f32 %v719_v52, 0.0  ;;  %v971_v8 = vpack.c.bf16 %v914_v2, %v913_v6 }
 0x112   : > { %v2254_v34 = vpop.f32.mrf.mxu0 }
 0x113   : > { %1168 = vmatmul.mubr.bf16.gmra.mxu0 %v968_v32  ;;  %v917_v42 = vmax.f32 %v711_v36, 0.0  ;;  %v722_v48 = vadd.f32 %v2254_v34, %v2565_v60 }
 0x114   : > { %v713_v37 = vpop.f32.mrf.mxu0  ;;  %1177 = vmatprep.mubr.bf16.mxu0 %v2396_v47 }
 0x115   : > { %v714_v39 = vadd.f32 %v2565_v60, %v713_v37  ;;  %v920_v54 = vmax.f32 %v722_v48, 0.0 }
 0x116   : > { %v2257_v40 = vpop.f32.mrf.mxu0 }
 0x117   : > { %v918_v43 = vmax.f32 %v714_v39, 0.0  ;;  %v974_v61 = vpack.c.bf16 %v920_v54, %v919_v57  ;;  %v735_v9 = vadd.f32 %v2257_v40, %v2565_v60 }
 0x118   : > { %v726_v45 = vpop.f32.mrf.mxu0 }
 0x119   : > { %v973_v49 = vpack.c.bf16 %v918_v43, %v917_v42  ;;  %v727_v62 = vadd.f32 %v2565_v60, %v726_v45  ;;  %v923_v15 = vmax.f32 %v735_v9, 0.0 }
 0x11a   : > { %v2258_v51 = vpop.f32.mrf.mxu0 }
 0x11b   : > { %1178 = vmatmul.mubr.bf16.gmra.mxu0 %v969_v46  ;;  %1218 = vmatmul.mubr.bf16.vlgmr.msra.gmra.mxu1 %v973_v49  ;;  %v921_v3 = vmax.f32 %v727_v62, 0.0  ;;  %v738_v10 = vadd.f32 %v2258_v51, %v2565_v60 }
 0x11c   : > { %1187 = vmatprep.mubr.bf16.mxu0 %v2396_v47  ;;  %1227 = vmatprep.mubr.bf16.mxu1 %v2396_v47  ;;  %v729_v56 = vpop.f32.mrf.mxu0 }
 0x11d   : > { %v730_v63 = vadd.f32 %v2565_v60, %v729_v56  ;;  %v924_v16 = vmax.f32 %v738_v10, 0.0 }
 0x11e   : > { %v2261_v0 = vpop.f32.mrf.mxu0 }
 0x11f   : > { %v922_v4 = vmax.f32 %v730_v63, 0.0  ;;  %v976_v21 = vpack.c.bf16 %v924_v16, %v923_v15  ;;  %v751_v27 = vadd.f32 %v2261_v0, %v2565_v60 }
 0x120   : > { %v742_v5 = vpop.f32.mrf.mxu0 }
 0x121   : > { %v975_v11 = vpack.c.bf16 %v922_v4, %v921_v3  ;;  %v743_v22 = vadd.f32 %v2565_v60, %v742_v5  ;;  %v927_v31 = vmax.f32 %v751_v27, 0.0 }
 0x122   : > { %v2262_v12 = vpop.f32.mrf.mxu0 }
 0x123   : > { %1188 = vmatmul.mubr.bf16.gmra.mxu0 %v970_v58  ;;  %1228 = vmatmul.mubr.bf16.gmra.mxu1 %v974_v61  ;;  %v925_v20 = vmax.f32 %v743_v22, 0.0  ;;  %v754_v28 = vadd.f32 %v2262_v12, %v2565_v60 }
 0x124   : > { %1197 = vmatprep.mubr.bf16.mxu0 %v2396_v47  ;;  %1237 = vmatprep.mubr.bf16.mxu1 %v2396_v47  ;;  %v745_v17 = vpop.f32.mrf.mxu0 }
 0x125   : > { %v746_v23 = vadd.f32 %v2565_v60, %v745_v17  ;;  %v928_v32 = vmax.f32 %v754_v28, 0.0 }
 0x126   : > { %v2265_v24 = vpop.f32.mrf.mxu0 }
 0x127   : > { %v926_v25 = vmax.f32 %v746_v23, 0.0  ;;  %v978_v34 = vpack.c.bf16 %v928_v32, %v927_v31  ;;  %v767_v41 = vadd.f32 %v2265_v24, %v2565_v60 }
 0x128   : > { %v758_v26 = vpop.f32.mrf.mxu0 }
 0x129   : > { %v977_v29 = vpack.c.bf16 %v926_v25, %v925_v20  ;;  %v759_v35 = vadd.f32 %v2565_v60, %v758_v26  ;;  %v931_v45 = vmax.f32 %v767_v41, 0.0 }
 0x12a   : > { %v2266_v30 = vpop.f32.mrf.mxu0 }
 0x12b   : > { %1198 = vmatmul.mubr.bf16.gmra.mxu0 %v971_v8  ;;  %1238 = vmatmul.mubr.bf16.gmra.mxu1 %v975_v11  ;;  %v929_v38 = vmax.f32 %v759_v35, 0.0  ;;  %v770_v42 = vadd.f32 %v2266_v30, %v2565_v60 }
 0x12c   : > { %1207 = vmatprep.mubr.bf16.mxu0 %v2396_v47  ;;  %1247 = vmatprep.mubr.bf16.mxu1 %v2396_v47  ;;  %v761_v33 = vpop.f32.mrf.mxu0 }
 0x12d   : > { %v762_v36 = vadd.f32 %v2565_v60, %v761_v33  ;;  %v932_v46 = vmax.f32 %v770_v42, 0.0 }
 0x12e   : > { %v2269_v37 = vpop.f32.mrf.mxu0 }
 0x12f   : > { %v930_v39 = vmax.f32 %v762_v36, 0.0  ;;  %v980_v49 = vpack.c.bf16 %v932_v46, %v931_v45  ;;  %v783_v56 = vadd.f32 %v2269_v37, %v2565_v60 }
 0x130   : > { %v774_v40 = vpop.f32.mrf.mxu0 }
 0x131   : > { %v979_v43 = vpack.c.bf16 %v930_v39, %v929_v38  ;;  %v775_v50 = vadd.f32 %v2565_v60, %v774_v40  ;;  %v935_v61 = vmax.f32 %v783_v56, 0.0 }
 0x132   : > { %v2270_v44 = vpop.f32.mrf.mxu0 }
 0x133   : > { %1208 = vmatmul.mubr.bf16.gmra.mxu0 %v972_v19  ;;  %1248 = vmatmul.mubr.bf16.gmra.mxu1 %v976_v21  ;;  %v933_v53 = vmax.f32 %v775_v50, 0.0  ;;  %v786_v57 = vadd.f32 %v2270_v44, %v2565_v60 }
 0x134   : > { %1257 = vmatprep.mubr.bf16.mxu1 %v2396_v47  ;;  %v777_v48 = vpop.f32.mrf.mxu0 }
 0x135   : > { %v778_v51 = vadd.f32 %v2565_v60, %v777_v48  ;;  %v936_v62 = vmax.f32 %v786_v57, 0.0 }
 0x136   : > { %v2273_v52 = vpop.f32.mrf.mxu0 }
 0x137   : > { %v934_v54 = vmax.f32 %v778_v51, 0.0  ;;  %v982_v0 = vpack.c.bf16 %v936_v62, %v935_v61  ;;  %v799_v7 = vadd.f32 %v2273_v52, %v2565_v60 }
 0x138   : > { %v790_v55 = vpop.f32.mrf.mxu0 }
 0x139   : > { %v981_v58 = vpack.c.bf16 %v934_v54, %v933_v53  ;;  %v791_v1 = vadd.f32 %v2565_v60, %v790_v55  ;;  %v939_v11 = vmax.f32 %v799_v7, 0.0  ;;  %v1015_v7 = vlaneseq }
 0x13a   : > { %v2274_v59 = vpop.f32.mrf.mxu0 }
 0x13b   : > { %1258 = vmatmul.mubr.bf16.gmra.mxu1 %v977_v29  ;;  %v937_v4 = vmax.f32 %v791_v1, 0.0  ;;  %v802_v8 = vadd.f32 %v2274_v59, %v2565_v60 }
 0x13c   : > { %1267 = vmatprep.mubr.bf16.mxu1 %v2396_v47  ;;  %v793_v63 = vpop.f32.mrf.mxu0 }
 0x13d   : > { %v794_v2 = vadd.f32 %v2565_v60, %v793_v63  ;;  %v940_v12 = vmax.f32 %v802_v8, 0.0 }
 0x13e   : > { %v2277_v3 = vpop.f32.mrf.mxu0 }
 0x13f   : > { %v938_v5 = vmax.f32 %v794_v2, 0.0  ;;  %v984_v14 = vpack.c.bf16 %v940_v12, %v939_v11  ;;  %v815_v22 = vadd.f32 %v2277_v3, %v2565_v60  ;;  %v1016_v11 = vshrl.u32 %v1015_v7, 7 }
 0x140   : > { %v806_v6 = vpop.f32.mrf.mxu0 }
 0x141   : > { %v983_v9 = vpack.c.bf16 %v938_v5, %v937_v4  ;;  %v807_v15 = vadd.f32 %v2565_v60, %v806_v6  ;;  %v943_v25 = vmax.f32 %v815_v22, 0.0 }
 0x142   : > { %v2278_v10 = vpop.f32.mrf.mxu0 }
 0x143   : > { %1268 = vmatmul.mubr.bf16.gmra.mxu1 %v978_v34  ;;  %v941_v18 = vmax.f32 %v807_v15, 0.0  ;;  %v818_v23 = vadd.f32 %v2278_v10, %v2565_v60 }
 0x144   : > { %1277 = vmatprep.mubr.bf16.mxu1 %v2396_v47  ;;  %v809_v13 = vpop.f32.mrf.mxu0 }
 0x145   : > { %v810_v16 = vadd.f32 %v2565_v60, %v809_v13  ;;  %v944_v26 = vmax.f32 %v818_v23, 0.0 }
 0x146   : > { %v2281_v17 = vpop.f32.mrf.mxu0 }
 0x147   : > { %v942_v19 = vmax.f32 %v810_v16, 0.0  ;;  %v986_v28 = vpack.c.bf16 %v944_v26, %v943_v25  ;;  %v831_v35 = vadd.f32 %v2281_v17, %v2565_v60  ;;  %v1017_v16 = vsub.s32 0, %v1016_v11 }
 0x148   : > { %v822_v21 = vpop.f32.mrf.mxu0 }
 0x149   : > { %v985_v24 = vpack.c.bf16 %v942_v19, %v941_v18  ;;  %v823_v29 = vadd.f32 %v2565_v60, %v822_v21  ;;  %v947_v39 = vmax.f32 %v831_v35, 0.0  ;;  %v1013_v19 = vld [vmem:[%s3144_s4] sm:$0x3]  ;;  %v1021_v21 = vsub.s32 1, %v1016_v11 }
 0x14a   : > { %v2282_v20 = vpop.f32.mrf.mxu0  ;;  %v2660_v23 = vrot.slane %v1013_v19, %v1017_v16 }
 0x14b   : > { %1278 = vmatmul.mubr.bf16.gmra.mxu1 %v979_v43  ;;  %v945_v32 = vmax.f32 %v823_v29, 0.0  ;;  %v834_v36 = vadd.f32 %v2282_v20, %v2565_v60  ;;  %v2664_v26 = vrot.slane %v1013_v19, %v1021_v21 }
 0x14c   : > { %1287 = vmatprep.mubr.bf16.mxu1 %v2396_v47  ;;  %v825_v27 = vpop.f32.mrf.mxu0 }
 0x14d   : > { %v826_v30 = vadd.f32 %v2565_v60, %v825_v27  ;;  %v948_v40 = vmax.f32 %v834_v36, 0.0 }
 0x14e   : > { %v2285_v31 = vpop.f32.mrf.mxu0 }
 0x14f   : > { %v946_v33 = vmax.f32 %v826_v30, 0.0  ;;  %v988_v43 = vpack.c.bf16 %v948_v40, %v947_v39  ;;  %v847_v51 = vadd.f32 %v2285_v31, %v2565_v60 }
 0x150   : > { %v838_v34 = vpop.f32.mrf.mxu0 }
 0x151   : > { %v987_v37 = vpack.c.bf16 %v946_v33, %v945_v32  ;;  %v839_v44 = vadd.f32 %v2565_v60, %v838_v34  ;;  %v951_v55 = vmax.f32 %v847_v51, 0.0 }
 0x152   : > { %v2286_v38 = vpop.f32.mrf.mxu0 }
 0x153   : > { %1288 = vmatmul.mubr.bf16.gmra.mxu1 %v980_v49  ;;  %v949_v48 = vmax.f32 %v839_v44, 0.0  ;;  %v850_v52 = vadd.f32 %v2286_v38, %v2565_v60 }
 0x154   : > { %1297 = vmatprep.mubr.bf16.mxu1 %v2396_v47  ;;  %v841_v41 = vpop.f32.mrf.mxu0 }
 0x155   : > { %v842_v45 = vadd.f32 %v2565_v60, %v841_v41  ;;  %v952_v56 = vmax.f32 %v850_v52, 0.0 }
 0x156   : > { %v2289_v42 = vpop.f32.mrf.mxu0 }
 0x157   : > { %v950_v49 = vmax.f32 %v842_v45, 0.0  ;;  %v863_v2 = vadd.f32 %v2289_v42, %v2565_v60 }
 0x158   : > { %v854_v46 = vpop.f32.mrf.mxu0 }
 0x159   : > { %v989_v53 = vpack.c.bf16 %v950_v49, %v949_v48  ;;  %v855_v59 = vadd.f32 %v2565_v60, %v854_v46  ;;  %v955_v8 = vmax.f32 %v863_v2, 0.0 }
 0x15a   : > { %v2290_v50 = vpop.f32.mrf.mxu0 }
 0x15b   : > { %1298 = vmatmul.mubr.bf16.gmra.mxu1 %v981_v58  ;;  %v990_v58 = vpack.c.bf16 %v952_v56, %v951_v55  ;;  %v953_v63 = vmax.f32 %v855_v59, 0.0  ;;  %v866_v3 = vadd.f32 %v2290_v50, %v2565_v60 }
 0x15c   : > { %1307 = vmatprep.mubr.bf16.mxu1 %v2396_v47  ;;  %v857_v54 = vpop.f32.mrf.mxu0 }
 0x15d   : > { %v858_v61 = vadd.f32 %v2565_v60, %v857_v54 }
 0x15e   : > { %v2293_v57 = vpop.f32.mrf.mxu0 }
 0x160   : > { %v870_v62 = vpop.f32.mrf.mxu0 }
 0x161   : > { %v871_v13 = vadd.f32 %v2565_v60, %v870_v62 }
 0x162   : > { %v2294_v1 = vpop.f32.mrf.mxu0 }
 0x163   : > { %1308 = vmatmul.mubr.bf16.gmra.mxu1 %v982_v0  ;;  %v954_v0 = vmax.f32 %v858_v61, 0.0  ;;  %v957_v17 = vmax.f32 %v871_v13, 0.0  ;;  %v882_v20 = vadd.f32 %v2294_v1, %v2565_v60 }
 0x164   : > { %1317 = vmatprep.mubr.bf16.mxu1 %v2396_v47  ;;  %v873_v5 = vpop.f32.mrf.mxu0 }
 0x165   : > { %v991_v4 = vpack.c.bf16 %v954_v0, %v953_v63  ;;  %v960_v31 = vmax.f32 %v882_v20, 0.0 }
 0x166   : > { %v2651_v6 = vpop.f32.mrf.mxu0 }
 0x167   : > { %v895_v1 = vadd.f32 %v2651_v6, %v2565_v60 }
 0x168   : > { %v886_v10 = vpop.f32.mrf.mxu0 }
 0x169   : > { %v887_v41 = vadd.f32 %v2565_v60, %v886_v10  ;;  %v963_v6 = vmax.f32 %v895_v1, 0.0 }
 0x16a   : > { %v2298_v15 = vpop.f32.mrf.mxu0 }
 0x16b   : > { %1318 = vmatmul.mubr.bf16.gmra.mxu1 %v983_v9  ;;  %v956_v9 = vmax.f32 %v866_v3, 0.0  ;;  %v898_v2 = vadd.f32 %v2298_v15, %v2565_v60 }
 0x16c   : > { %1327 = vmatprep.mubr.bf16.mxu1 %v2396_v47  ;;  %v889_v22 = vpop.f32.mrf.mxu0 }
 0x16d   : > { %v992_v12 = vpack.c.bf16 %v956_v9, %v955_v8  ;;  %v890_v42 = vadd.f32 %v2565_v60, %v889_v22 }
 0x16f   : > { %v962_v54 = vmax.f32 %v890_v42, 0.0 }
 0x173   : > { %1328 = vmatmul.mubr.bf16.gmra.mxu1 %v984_v14  ;;  %v874_v14 = vadd.f32 %v2565_v60, %v873_v5 }
 0x174   : > { %1337 = vmatprep.mubr.bf16.mxu1 %v2396_v47 }
 0x175   : > { %v958_v18 = vmax.f32 %v874_v14, 0.0 }
 0x177   : > { %v993_v25 = vpack.c.bf16 %v958_v18, %v957_v17 }
 0x17b   : > { %1338 = vmatmul.mubr.bf16.gmra.mxu1 %v985_v24  ;;  %v879_v24 = vadd.f32 %v2293_v57, %v2565_v60  ;;  %v964_v60 = vmax.f32 %v898_v2, 0.0 }
 0x17c   : > { %1347 = vmatprep.mubr.bf16.mxu1 %v2396_v47 }
 0x17d   : > { %v959_v30 = vmax.f32 %v879_v24, 0.0  ;;  %v996_v20 = vpack.c.bf16 %v964_v60, %v963_v6 }
 0x17f   : > { %v994_v40 = vpack.c.bf16 %v960_v31, %v959_v30 }
 0x183   : > { %1348 = vmatmul.mubr.bf16.gmra.mxu1 %v986_v28  ;;  %v1586_v28 = vld [vmem:[%s3145_s5] sm:$0x3] }
 0x184   : > { %1357 = vmatprep.mubr.bf16.mxu1 %v2396_v47  ;;  %v2672_v35 = vrot.slane %v1586_v28, %v1017_v16  ;;  %v2674_v36 = vrot.slane %v1586_v28, %v1021_v21 }
 0x18b   : > { %1358 = vmatmul.mubr.bf16.gmra.mxu1 %v987_v37 }
 0x18c   : > { %1367 = vmatprep.mubr.bf16.mxu1 %v2396_v47 }
 0x193   : > { %1368 = vmatmul.mubr.bf16.gmra.mxu1 %v988_v43 }
 0x194   : > { %1377 = vmatprep.mubr.bf16.mxu1 %v2396_v47 }
 0x19b   : > { %1378 = vmatmul.mubr.bf16.gmra.mxu1 %v989_v53  ;;  %v961_v53 = vmax.f32 %v887_v41, 0.0 }
 0x19c   : > { %1387 = vmatprep.mubr.bf16.mxu1 %v2396_v47 }
 0x19d   : > { %v995_v3 = vpack.c.bf16 %v962_v54, %v961_v53 }
 0x1a3   : > { %1388 = vmatmul.mubr.bf16.gmra.mxu1 %v990_v58 }
 0x1a4   : > { %1397 = vmatprep.mubr.bf16.mxu1 %v2396_v47 }
 0x1ab   : > { %1398 = vmatmul.mubr.bf16.gmra.mxu1 %v991_v4 }
 0x1ac   : > { %1407 = vmatprep.mubr.bf16.mxu1 %v2396_v47 }
 0x1b3   : > { %1408 = vmatmul.mubr.bf16.gmra.mxu1 %v992_v12 }
 0x1b4   : > { %1417 = vmatprep.mubr.bf16.mxu1 %v2396_v47 }
 0x1bb   : > { %v1139_v27 = vpop.f32.mrf.mxu0  ;;  %1418 = vmatmul.mubr.bf16.gmra.mxu1 %v993_v25 }
 0x1bc   : > { %v1140_v29 = vadd.f32 %v1139_v27, %v2660_v23  ;;  %1427 = vmatprep.mubr.bf16.mxu1 %v2396_v47 }
 0x1bd   : > { %v1141_v32 = vpop.f32.mrf.mxu0 }
 0x1be   : > { %v1458_v33 = vmax.f32 %v1140_v29, 0.0  ;;  %v1142_v34 = vadd.f32 %v1141_v32, %v2664_v26 }
 0x1bf   : > { %v1143_v37 = vpop.f32.mrf.mxu0 }
 0x1c0   : > { %v1459_v38 = vmax.f32 %v1142_v34, 0.0  ;;  %v1144_v39 = vadd.f32 %v1143_v37, %v2660_v23  ;;  %v1598_v46 = vmul.f32 %v2672_v35, %v1458_v33 }
 0x1c1   : > { %v1145_v43 = vpop.f32.mrf.mxu0 }
 0x1c2   : > { %v1460_v44 = vmax.f32 %v1144_v39, 0.0  ;;  %v1146_v45 = vadd.f32 %v1145_v43, %v2664_v26  ;;  %v1599_v48 = vmul.f32 %v2674_v36, %v1459_v38 }
 0x1c3   : > { %v1149_v49 = vpop.f32.mrf.mxu0  ;;  %1428 = vmatmul.mubr.bf16.gmra.mxu1 %v994_v40 }
 0x1c4   : > { %v1461_v50 = vmax.f32 %v1146_v45, 0.0  ;;  %v1150_v51 = vadd.f32 %v1149_v49, %v2660_v23  ;;  %v1726_v52 = vadd.f32 %v1599_v48, %v1598_v46  ;;  %1437 = vmatprep.mubr.bf16.mxu1 %v2396_v47  ;;  %v1600_v56 = vmul.f32 %v2672_v35, %v1460_v44 }
 0x1c5   : > { %v1151_v55 = vpop.f32.mrf.mxu0 }
 0x1c6   : > { %v1601_v57 = vmul.f32 %v2674_v36, %v1461_v50  ;;  %v1462_v58 = vmax.f32 %v1150_v51, 0.0  ;;  %v1152_v59 = vadd.f32 %v1151_v55, %v2664_v26  ;;  %1727 = vadd.xlane.f32.xlu0 %v1726_v52 }
 0x1c7   : > { %v1153_v61 = vpop.f32.mrf.mxu0 }
 0x1c8   : > { %v1463_v62 = vmax.f32 %v1152_v59, 0.0  ;;  %v1154_v63 = vadd.f32 %v1153_v61, %v2660_v23  ;;  %v1729_v0 = vadd.f32 %v1601_v57, %v1600_v56  ;;  %v1602_v8 = vmul.f32 %v2672_v35, %v1462_v58 }
 0x1c9   : > { %v1155_v4 = vpop.f32.mrf.mxu0 }
 0x1ca   : > { %v1464_v5 = vmax.f32 %v1154_v63, 0.0  ;;  %v1156_v7 = vadd.f32 %v1155_v4, %v2664_v26  ;;  %1730 = vadd.xlane.f32.xlu0 %v1729_v0  ;;  %v1603_v9 = vmul.f32 %v2674_v36, %v1463_v62 }
 0x1cb   : > { %v1159_v10 = vpop.f32.mrf.mxu0  ;;  %1438 = vmatmul.mubr.bf16.gmra.mxu1 %v995_v3 }
 0x1cc   : > { %v1465_v11 = vmax.f32 %v1156_v7, 0.0  ;;  %v1160_v12 = vadd.f32 %v1159_v10, %v2660_v23  ;;  %v1732_v13 = vadd.f32 %v1603_v9, %v1602_v8  ;;  %1447 = vmatprep.mubr.bf16.mxu1 %v2396_v47  ;;  %v1604_v15 = vmul.f32 %v2672_v35, %v1464_v5 }
 0x1cd   : > { %v1161_v14 = vpop.f32.mrf.mxu0 }
 0x1ce   : > { %v1605_v16 = vmul.f32 %v2674_v36, %v1465_v11  ;;  %v1466_v17 = vmax.f32 %v1160_v12, 0.0  ;;  %v1162_v18 = vadd.f32 %v1161_v14, %v2664_v26  ;;  %1733 = vadd.xlane.f32.xlu1 %v1732_v13 }
 0x1cf   : > { %v1163_v19 = vpop.f32.mrf.mxu0 }
 0x1d0   : > { %v1467_v21 = vmax.f32 %v1162_v18, 0.0  ;;  %v1164_v22 = vadd.f32 %v1163_v19, %v2660_v23  ;;  %v1735_v24 = vadd.f32 %v1605_v16, %v1604_v15  ;;  %v1606_v47 = vmul.f32 %v2672_v35, %v1466_v17 }
 0x1d1   : > { %v1165_v25 = vpop.f32.mrf.mxu0 }
 0x1d2   : > { %v1607_v27 = vmul.f32 %v2674_v36, %v1467_v21  ;;  %v1468_v28 = vmax.f32 %v1164_v22, 0.0  ;;  %v1166_v29 = vadd.f32 %v1165_v25, %v2664_v26  ;;  %1736 = vadd.xlane.f32.xlu1 %v1735_v24 }
 0x1d3   : > { %v1169_v30 = vpop.f32.mrf.mxu0  ;;  %1448 = vmatmul.mubr.bf16.gmra.mxu1 %v996_v20 }
 0x1d4   : > { %v1469_v31 = vmax.f32 %v1166_v29, 0.0  ;;  %v1170_v32 = vadd.f32 %v1169_v30, %v2660_v23  ;;  %v1738_v33 = vadd.f32 %v1607_v27, %v1606_v47  ;;  %v1608_v37 = vmul.f32 %v2672_v35, %v1468_v28 }
 0x1d5   : > { %v1171_v34 = vpop.f32.mrf.mxu0 }
 0x1d6   : > { %v1609_v38 = vmul.f32 %v2674_v36, %v1469_v31  ;;  %v1172_v39 = vadd.f32 %v1171_v34, %v2664_v26  ;;  %1739 = vadd.xlane.f32.xlu0 %v1738_v33  ;;  %v1470_v40 = vmax.f32 %v1170_v32, 0.0 }
 0x1d7   : > { %v1173_v41 = vpop.f32.mrf.mxu0 }
 0x1d8   : > { %v1471_v42 = vmax.f32 %v1172_v39, 0.0  ;;  %v1174_v43 = vadd.f32 %v1173_v41, %v2660_v23  ;;  %v1741_v44 = vadd.f32 %v1609_v38, %v1608_v37  ;;  %v1610_v49 = vmul.f32 %v2672_v35, %v1470_v40 }
 0x1d9   : > { %v1175_v45 = vpop.f32.mrf.mxu0 }
 0x1da   : > { %v1611_v46 = vmul.f32 %v2674_v36, %v1471_v42  ;;  %v1176_v48 = vadd.f32 %v1175_v45, %v2664_v26  ;;  %1742 = vadd.xlane.f32.xlu1 %v1741_v44  ;;  %v1472_v50 = vmax.f32 %v1174_v43, 0.0 }
 0x1db   : > { %v1179_v51 = vpop.f32.mrf.mxu0  ;;  %v1219_v52 = vpop.f32.mrf.mxu1 }
 0x1dc   : > { %v1473_v53 = vmax.f32 %v1176_v48, 0.0  ;;  %v1180_v54 = vadd.f32 %v1179_v51, %v2660_v23  ;;  %v1744_v57 = vadd.f32 %v1611_v46, %v1610_v49  ;;  %v1612_v61 = vmul.f32 %v2672_v35, %v1472_v50 }
 0x1dd   : > { %v1181_v55 = vpop.f32.mrf.mxu0  ;;  %v1221_v56 = vpop.f32.mrf.mxu1  ;;  %v1220_v63 = vadd.f32 %v1219_v52, %v2660_v23 }
 0x1de   : > { %v1613_v58 = vmul.f32 %v2674_v36, %v1473_v53  ;;  %v1182_v59 = vadd.f32 %v1181_v55, %v2664_v26  ;;  %v1474_v62 = vmax.f32 %v1180_v54, 0.0  ;;  %v1222_v0 = vadd.f32 %v1221_v56, %v2664_v26  ;;  %1745 = vadd.xlane.f32.xlu0 %v1744_v57 }
 0x1df   : > { %v1183_v1 = vpop.f32.mrf.mxu0  ;;  %v1223_v2 = vpop.f32.mrf.mxu1  ;;  %v1490_v60 = vmax.f32 %v1220_v63, 0.0 }
 0x1e0   : > { %v1475_v3 = vmax.f32 %v1182_v59, 0.0  ;;  %v1184_v4 = vadd.f32 %v1183_v1, %v2660_v23  ;;  %v1491_v5 = vmax.f32 %v1222_v0, 0.0  ;;  %v1747_v9 = vadd.f32 %v1613_v58, %v1612_v61 }
 0x1e1   : > { %v1185_v7 = vpop.f32.mrf.mxu0  ;;  %v1225_v8 = vpop.f32.mrf.mxu1  ;;  %v1224_v11 = vadd.f32 %v1223_v2, %v2660_v23  ;;  %v1614_v6 = vmul.f32 %v2672_v35, %v1474_v62  ;;  %v1630_v29 = vmul.f32 %v2672_v35, %v1490_v60 }
 0x1e2   : > { %v1615_v10 = vmul.f32 %v2674_v36, %v1475_v3  ;;  %v1186_v12 = vadd.f32 %v1185_v7, %v2664_v26  ;;  %v1226_v13 = vadd.f32 %v1225_v8, %v2664_v26  ;;  %v1476_v14 = vmax.f32 %v1184_v4, 0.0  ;;  %1748 = vadd.xlane.f32.xlu1 %v1747_v9 }
 0x1e3   : > { %v1189_v15 = vpop.f32.mrf.mxu0  ;;  %v1229_v16 = vpop.f32.mrf.mxu1  ;;  %v1631_v19 = vmul.f32 %v2674_v36, %v1491_v5  ;;  %v1492_v25 = vmax.f32 %v1224_v11, 0.0 }
 0x1e4   : > { %v1477_v17 = vmax.f32 %v1186_v12, 0.0  ;;  %v1190_v18 = vadd.f32 %v1189_v15, %v2660_v23  ;;  %v1493_v21 = vmax.f32 %v1226_v13, 0.0  ;;  %v1750_v20 = vadd.f32 %v1615_v10, %v1614_v6 }
 0x1e5   : > { %v1191_v22 = vpop.f32.mrf.mxu0  ;;  %v1231_v24 = vpop.f32.mrf.mxu1  ;;  %v1230_v27 = vadd.f32 %v1229_v16, %v2660_v23  ;;  %v1616_v30 = vmul.f32 %v2672_v35, %v1476_v14  ;;  %v1774_v44 = vadd.f32 %v1631_v19, %v1630_v29  ;;  %v1632_v45 = vmul.f32 %v2672_v35, %v1492_v25 }
 0x1e6   : > { %v1617_v47 = vmul.f32 %v2674_v36, %v1477_v17  ;;  %v1192_v28 = vadd.f32 %v1191_v22, %v2664_v26  ;;  %v1478_v31 = vmax.f32 %v1190_v18, 0.0  ;;  %v1232_v32 = vadd.f32 %v1231_v24, %v2664_v26  ;;  %1751 = vadd.xlane.f32.xlu0 %v1750_v20 }
 0x1e7   : > { %v1193_v33 = vpop.f32.mrf.mxu0  ;;  %v1233_v34 = vpop.f32.mrf.mxu1  ;;  %v1633_v39 = vmul.f32 %v2674_v36, %v1493_v21  ;;  %v1494_v46 = vmax.f32 %v1230_v27, 0.0 }
 0x1e8   : > { %v1479_v37 = vmax.f32 %v1192_v28, 0.0  ;;  %v1194_v38 = vadd.f32 %v1193_v33, %v2660_v23  ;;  %v1495_v40 = vmax.f32 %v1232_v32, 0.0  ;;  %v1753_v43 = vadd.f32 %v1617_v47, %v1616_v30 }
 0x1e9   : > { %v1195_v41 = vpop.f32.mrf.mxu0  ;;  %v1235_v42 = vpop.f32.mrf.mxu1  ;;  %v1618_v50 = vmul.f32 %v2672_v35, %v1478_v31  ;;  %v1234_v52 = vadd.f32 %v1233_v34, %v2660_v23  ;;  %v1777_v63 = vadd.f32 %v1633_v39, %v1632_v45  ;;  %v1634_v5 = vmul.f32 %v2672_v35, %v1494_v46 }
 0x1ea   : > { %v1619_v48 = vmul.f32 %v2674_v36, %v1479_v37  ;;  %v1196_v49 = vadd.f32 %v1195_v41, %v2664_v26  ;;  %v1480_v51 = vmax.f32 %v1194_v38, 0.0  ;;  %v1236_v53 = vadd.f32 %v1235_v42, %v2664_v26  ;;  %1754 = vadd.xlane.f32.xlu1 %v1753_v43  ;;  %1775 = vadd.xlane.f32.xlu0 %v1774_v44 }
 0x1eb   : > { %v1199_v54 = vpop.f32.mrf.mxu0  ;;  %v1239_v55 = vpop.f32.mrf.mxu1  ;;  %v1635_v58 = vmul.f32 %v2674_v36, %v1495_v40  ;;  %v1496_v8 = vmax.f32 %v1234_v52, 0.0 }
 0x1ec   : > { %v1481_v56 = vmax.f32 %v1196_v49, 0.0  ;;  %v1200_v57 = vadd.f32 %v1199_v54, %v2660_v23  ;;  %v1497_v59 = vmax.f32 %v1236_v53, 0.0  ;;  %v1756_v0 = vadd.f32 %v1619_v48, %v1618_v50 }
 0x1ed   : > { %v1201_v61 = vpop.f32.mrf.mxu0  ;;  %v1241_v62 = vpop.f32.mrf.mxu1  ;;  %v1240_v2 = vadd.f32 %v1239_v55, %v2660_v23  ;;  %v1620_v7 = vmul.f32 %v2672_v35, %v1480_v51  ;;  %v1780_v17 = vadd.f32 %v1635_v58, %v1634_v5  ;;  %v1636_v24 = vmul.f32 %v2672_v35, %v1496_v8 }
 0x1ee   : > { %v1621_v1 = vmul.f32 %v2674_v36, %v1481_v56  ;;  %v1202_v3 = vadd.f32 %v1201_v61, %v2664_v26  ;;  %v1242_v4 = vadd.f32 %v1241_v62, %v2664_v26  ;;  %v1482_v9 = vmax.f32 %v1200_v57, 0.0  ;;  %1778 = vadd.xlane.f32.xlu1 %v1777_v63  ;;  %1757 = vadd.xlane.f32.xlu0 %v1756_v0 }
 0x1ef   : > { %v1203_v10 = vpop.f32.mrf.mxu0  ;;  %v1243_v11 = vpop.f32.mrf.mxu1  ;;  %v1637_v6 = vmul.f32 %v2674_v36, %v1497_v59  ;;  %v1498_v18 = vmax.f32 %v1240_v2, 0.0 }
 0x1f0   : > { %v1483_v12 = vmax.f32 %v1202_v3, 0.0  ;;  %v1204_v13 = vadd.f32 %v1203_v10, %v2660_v23  ;;  %v1499_v60 = vmax.f32 %v1242_v4, 0.0  ;;  %v1759_v16 = vadd.f32 %v1621_v1, %v1620_v7 }
 0x1f1   : > { %v1205_v14 = vpop.f32.mrf.mxu0  ;;  %v1245_v15 = vpop.f32.mrf.mxu1  ;;  %v1244_v21 = vadd.f32 %v1243_v11, %v2660_v23  ;;  %v1622_v20 = vmul.f32 %v2672_v35, %v1482_v9  ;;  %v1783_v37 = vadd.f32 %v1637_v6, %v1636_v24  ;;  %v1638_v39 = vmul.f32 %v2672_v35, %v1498_v18 }
 0x1f2   : > { %v1623_v19 = vmul.f32 %v2674_v36, %v1483_v12  ;;  %v1206_v22 = vadd.f32 %v1205_v14, %v2664_v26  ;;  %v1484_v25 = vmax.f32 %v1204_v13, 0.0  ;;  %v1246_v47 = vadd.f32 %v1245_v15, %v2664_v26  ;;  %1760 = vadd.xlane.f32.xlu1 %v1759_v16  ;;  %1781 = vadd.xlane.f32.xlu0 %v1780_v17 }
 0x1f3   : > { %v1209_v27 = vpop.f32.mrf.mxu0  ;;  %v1249_v28 = vpop.f32.mrf.mxu1  ;;  %v1639_v31 = vmul.f32 %v2674_v36, %v1499_v60  ;;  %v1500_v40 = vmax.f32 %v1244_v21, 0.0 }
 0x1f4   : > { %v1485_v29 = vmax.f32 %v1206_v22, 0.0  ;;  %v1210_v30 = vadd.f32 %v1209_v27, %v2660_v23  ;;  %v1501_v32 = vmax.f32 %v1246_v47, 0.0  ;;  %v1762_v38 = vadd.f32 %v1623_v19, %v1622_v20 }
 0x1f5   : > { %v1211_v33 = vpop.f32.mrf.mxu0  ;;  %v1251_v34 = vpop.f32.mrf.mxu1  ;;  %v1624_v43 = vmul.f32 %v2672_v35, %v1484_v25  ;;  %v1250_v45 = vadd.f32 %v1249_v28, %v2660_v23  ;;  %v1786_v57 = vadd.f32 %v1639_v31, %v1638_v39  ;;  %v1640_v63 = vmul.f32 %v2672_v35, %v1500_v40 }
 0x1f6   : > { %v1625_v41 = vmul.f32 %v2674_v36, %v1485_v29  ;;  %v1212_v42 = vadd.f32 %v1211_v33, %v2664_v26  ;;  %v1486_v44 = vmax.f32 %v1210_v30, 0.0  ;;  %v1252_v46 = vadd.f32 %v1251_v34, %v2664_v26  ;;  %1784 = vadd.xlane.f32.xlu1 %v1783_v37  ;;  %1763 = vadd.xlane.f32.xlu0 %v1762_v38 }
 0x1f7   : > { %v1213_v48 = vpop.f32.mrf.mxu0  ;;  %v1253_v49 = vpop.f32.mrf.mxu1  ;;  %v1641_v52 = vmul.f32 %v2674_v36, %v1501_v32  ;;  %v1502_v1 = vmax.f32 %v1250_v45, 0.0 }
 0x1f8   : > { %v1487_v50 = vmax.f32 %v1212_v42, 0.0  ;;  %v1214_v51 = vadd.f32 %v1213_v48, %v2660_v23  ;;  %v1503_v53 = vmax.f32 %v1252_v46, 0.0  ;;  %v1765_v56 = vadd.f32 %v1625_v41, %v1624_v43 }
 0x1f9   : > { %v1215_v54 = vpop.f32.mrf.mxu0  ;;  %v1255_v55 = vpop.f32.mrf.mxu1  ;;  %v1626_v0 = vmul.f32 %v2672_v35, %v1486_v44  ;;  %v1254_v2 = vadd.f32 %v1253_v49, %v2660_v23  ;;  %v1789_v10 = vadd.f32 %v1641_v52, %v1640_v63  ;;  %v1642_v14 = vmul.f32 %v2672_v35, %v1502_v1 }
 0x1fa   : > { %v1627_v58 = vmul.f32 %v2674_v36, %v1487_v50  ;;  %v1488_v59 = vmax.f32 %v1214_v51, 0.0  ;;  %v1216_v61 = vadd.f32 %v1215_v54, %v2664_v26  ;;  %v1256_v62 = vadd.f32 %v1255_v55, %v2664_v26  ;;  %1766 = vadd.xlane.f32.xlu1 %v1765_v56  ;;  %1787 = vadd.xlane.f32.xlu0 %v1786_v57 }
 0x1fb   : > { %v1259_v3 = vpop.f32.mrf.mxu1  ;;  %v1643_v7 = vmul.f32 %v2674_v36, %v1503_v53  ;;  %v1504_v15 = vmax.f32 %v1254_v2, 0.0 }
 0x1fc   : > { %v1489_v4 = vmax.f32 %v1216_v61, 0.0  ;;  %v1260_v5 = vadd.f32 %v1259_v3, %v2660_v23  ;;  %v1505_v8 = vmax.f32 %v1256_v62, 0.0  ;;  %v1768_v11 = vadd.f32 %v1627_v58, %v1626_v0 }
 0x1fd   : > { %v1261_v9 = vpop.f32.mrf.mxu1  ;;  %v1628_v12 = vmul.f32 %v2672_v35, %v1488_v59  ;;  %v1792_v24 = vadd.f32 %v1643_v7, %v1642_v14  ;;  %v1644_v28 = vmul.f32 %v2672_v35, %v1504_v15 }
 0x1fe   : > { %v1629_v13 = vmul.f32 %v2674_v36, %v1489_v4  ;;  %v1506_v6 = vmax.f32 %v1260_v5, 0.0  ;;  %v1262_v60 = vadd.f32 %v1261_v9, %v2664_v26  ;;  %1790 = vadd.xlane.f32.xlu1 %v1789_v10  ;;  %1769 = vadd.xlane.f32.xlu0 %v1768_v11  ;;  %v1645_v21 = vmul.f32 %v2674_v36, %v1505_v8 }
 0x1ff   : > { %v1263_v16 = vpop.f32.mrf.mxu1 }
 0x200   : > { %v1507_v17 = vmax.f32 %v1262_v60, 0.0  ;;  %v1264_v18 = vadd.f32 %v1263_v16, %v2660_v23  ;;  %v1771_v19 = vadd.f32 %v1629_v13, %v1628_v12  ;;  %v1646_v20 = vmul.f32 %v2672_v35, %v1506_v6 }
 0x201   : > { %v1265_v22 = vpop.f32.mrf.mxu1  ;;  %v1795_v34 = vadd.f32 %v1645_v21, %v1644_v28 }
 0x202   : > { %v1647_v25 = vmul.f32 %v2674_v36, %v1507_v17  ;;  %v1508_v47 = vmax.f32 %v1264_v18, 0.0  ;;  %v1266_v27 = vadd.f32 %v1265_v22, %v2664_v26  ;;  %1772 = vadd.xlane.f32.xlu1 %v1771_v19  ;;  %1793 = vadd.xlane.f32.xlu0 %v1792_v24 }
 0x203   : > { %v1269_v29 = vpop.f32.mrf.mxu1 }
 0x204   : > { %v1509_v30 = vmax.f32 %v1266_v27, 0.0  ;;  %v1270_v31 = vadd.f32 %v1269_v29, %v2660_v23  ;;  %v1798_v32 = vadd.f32 %v1647_v25, %v1646_v20  ;;  %v1648_v37 = vmul.f32 %v2672_v35, %v1508_v47 }
 0x205   : > { %v1271_v33 = vpop.f32.mrf.mxu1 }
 0x206   : > { %v1649_v38 = vmul.f32 %v2674_v36, %v1509_v30  ;;  %v1510_v39 = vmax.f32 %v1270_v31, 0.0  ;;  %v1272_v40 = vadd.f32 %v1271_v33, %v2664_v26  ;;  %1796 = vadd.xlane.f32.xlu1 %v1795_v34  ;;  %1799 = vadd.xlane.f32.xlu0 %v1798_v32 }
 0x207   : > { %v1273_v41 = vpop.f32.mrf.mxu1 }
 0x208   : > { %v1511_v42 = vmax.f32 %v1272_v40, 0.0  ;;  %v1274_v43 = vadd.f32 %v1273_v41, %v2660_v23  ;;  %v1801_v44 = vadd.f32 %v1649_v38, %v1648_v37  ;;  %v1650_v46 = vmul.f32 %v2672_v35, %v1510_v39 }
 0x209   : > { %v1275_v45 = vpop.f32.mrf.mxu1 }
 0x20a   : > { %v1651_v48 = vmul.f32 %v2674_v36, %v1511_v42  ;;  %v1512_v49 = vmax.f32 %v1274_v43, 0.0  ;;  %v1276_v50 = vadd.f32 %v1275_v45, %v2664_v26  ;;  %1802 = vadd.xlane.f32.xlu1 %v1801_v44 }
 0x20b   : > { %v1279_v51 = vpop.f32.mrf.mxu1 }
 0x20c   : > { %v1513_v52 = vmax.f32 %v1276_v50, 0.0  ;;  %v1280_v53 = vadd.f32 %v1279_v51, %v2660_v23  ;;  %v1804_v54 = vadd.f32 %v1651_v48, %v1650_v46  ;;  %v1652_v56 = vmul.f32 %v2672_v35, %v1512_v49 }
 0x20d   : > { %v1281_v55 = vpop.f32.mrf.mxu1 }
 0x20e   : > { %v1653_v57 = vmul.f32 %v2674_v36, %v1513_v52  ;;  %v1514_v58 = vmax.f32 %v1280_v53, 0.0  ;;  %v1282_v59 = vadd.f32 %v1281_v55, %v2664_v26  ;;  %1805 = vadd.xlane.f32.xlu0 %v1804_v54 }
 0x20f   : > { %v1283_v61 = vpop.f32.mrf.mxu1 }
 0x210   : > { %v1515_v62 = vmax.f32 %v1282_v59, 0.0  ;;  %v1284_v63 = vadd.f32 %v1283_v61, %v2660_v23  ;;  %v1807_v0 = vadd.f32 %v1653_v57, %v1652_v56  ;;  %v1654_v2 = vmul.f32 %v2672_v35, %v1514_v58 }
 0x211   : > { %v1285_v1 = vpop.f32.mrf.mxu1 }
 0x212   : > { %v1655_v3 = vmul.f32 %v2674_v36, %v1515_v62  ;;  %v1516_v4 = vmax.f32 %v1284_v63, 0.0  ;;  %v1286_v5 = vadd.f32 %v1285_v1, %v2664_v26  ;;  %1808 = vadd.xlane.f32.xlu1 %v1807_v0 }
 0x213   : > { %v1289_v7 = vpop.f32.mrf.mxu1 }
 0x214   : > { %v1517_v8 = vmax.f32 %v1286_v5, 0.0  ;;  %v1290_v9 = vadd.f32 %v1289_v7, %v2660_v23  ;;  %v1810_v10 = vadd.f32 %v1655_v3, %v1654_v2  ;;  %v1656_v12 = vmul.f32 %v2672_v35, %v1516_v4 }
 0x215   : > { %v1291_v11 = vpop.f32.mrf.mxu1 }
 0x216   : > { %v1657_v13 = vmul.f32 %v2674_v36, %v1517_v8  ;;  %v1518_v6 = vmax.f32 %v1290_v9, 0.0  ;;  %v1292_v60 = vadd.f32 %v1291_v11, %v2664_v26  ;;  %1811 = vadd.xlane.f32.xlu0 %v1810_v10 }
 0x217   : > { %v1293_v14 = vpop.f32.mrf.mxu1 }
 0x218   : > { %v1519_v15 = vmax.f32 %v1292_v60, 0.0  ;;  %v1294_v16 = vadd.f32 %v1293_v14, %v2660_v23  ;;  %v1813_v17 = vadd.f32 %v1657_v13, %v1656_v12  ;;  %v1658_v19 = vmul.f32 %v2672_v35, %v1518_v6 }
 0x219   : > { %v1295_v18 = vpop.f32.mrf.mxu1 }
 0x21a   : > { %v1659_v21 = vmul.f32 %v2674_v36, %v1519_v15  ;;  %v1520_v22 = vmax.f32 %v1294_v16, 0.0  ;;  %v1296_v24 = vadd.f32 %v1295_v18, %v2664_v26  ;;  %1814 = vadd.xlane.f32.xlu1 %v1813_v17 }
 0x21b   : > { %v1299_v20 = vpop.f32.mrf.mxu1 }
 0x21c   : > { %v1521_v25 = vmax.f32 %v1296_v24, 0.0  ;;  %v1300_v47 = vadd.f32 %v1299_v20, %v2660_v23  ;;  %v1816_v27 = vadd.f32 %v1659_v21, %v1658_v19  ;;  %v1660_v29 = vmul.f32 %v2672_v35, %v1520_v22 }
 0x21d   : > { %v1301_v28 = vpop.f32.mrf.mxu1 }
 0x21e   : > { %v1661_v30 = vmul.f32 %v2674_v36, %v1521_v25  ;;  %v1522_v31 = vmax.f32 %v1300_v47, 0.0  ;;  %v1302_v32 = vadd.f32 %v1301_v28, %v2664_v26  ;;  %1817 = vadd.xlane.f32.xlu0 %v1816_v27 }
 0x21f   : > { %v1303_v33 = vpop.f32.mrf.mxu1 }
 0x220   : > { %v1523_v34 = vmax.f32 %v1302_v32, 0.0  ;;  %v1304_v37 = vadd.f32 %v1303_v33, %v2660_v23  ;;  %v1819_v38 = vadd.f32 %v1661_v30, %v1660_v29  ;;  %v1662_v40 = vmul.f32 %v2672_v35, %v1522_v31 }
 0x221   : > { %v1305_v39 = vpop.f32.mrf.mxu1 }
 0x222   : > { %v1663_v41 = vmul.f32 %v2674_v36, %v1523_v34  ;;  %v1524_v42 = vmax.f32 %v1304_v37, 0.0  ;;  %v1306_v43 = vadd.f32 %v1305_v39, %v2664_v26  ;;  %1820 = vadd.xlane.f32.xlu1 %v1819_v38 }
 0x223   : > { %v1309_v44 = vpop.f32.mrf.mxu1 }
 0x224   : > { %v1525_v45 = vmax.f32 %v1306_v43, 0.0  ;;  %v1310_v46 = vadd.f32 %v1309_v44, %v2660_v23  ;;  %v1822_v48 = vadd.f32 %v1663_v41, %v1662_v40  ;;  %v1664_v50 = vmul.f32 %v2672_v35, %v1524_v42 }
 0x225   : > { %v1311_v49 = vpop.f32.mrf.mxu1 }
 0x226   : > { %v1665_v51 = vmul.f32 %v2674_v36, %v1525_v45  ;;  %v1526_v52 = vmax.f32 %v1310_v46, 0.0  ;;  %v1312_v53 = vadd.f32 %v1311_v49, %v2664_v26  ;;  %1823 = vadd.xlane.f32.xlu0 %v1822_v48 }
 0x227   : > { %v1313_v54 = vpop.f32.mrf.mxu1 }
 0x228   : > { %v1527_v55 = vmax.f32 %v1312_v53, 0.0  ;;  %v1314_v56 = vadd.f32 %v1313_v54, %v2660_v23  ;;  %v1825_v57 = vadd.f32 %v1665_v51, %v1664_v50  ;;  %v1666_v59 = vmul.f32 %v2672_v35, %v1526_v52 }
 0x229   : > { %v1315_v58 = vpop.f32.mrf.mxu1 }
 0x22a   : > { %v1667_v61 = vmul.f32 %v2674_v36, %v1527_v55  ;;  %v1528_v62 = vmax.f32 %v1314_v56, 0.0  ;;  %v1316_v63 = vadd.f32 %v1315_v58, %v2664_v26  ;;  %1826 = vadd.xlane.f32.xlu1 %v1825_v57 }
 0x22b   : > { %v1319_v0 = vpop.f32.mrf.mxu1 }
 0x22c   : > { %v1529_v1 = vmax.f32 %v1316_v63, 0.0  ;;  %v1320_v2 = vadd.f32 %v1319_v0, %v2660_v23  ;;  %v1828_v3 = vadd.f32 %v1667_v61, %v1666_v59  ;;  %v1668_v5 = vmul.f32 %v2672_v35, %v1528_v62 }
 0x22d   : > { %v1321_v4 = vpop.f32.mrf.mxu1 }
 0x22e   : > { %v1669_v7 = vmul.f32 %v2674_v36, %v1529_v1  ;;  %v1530_v8 = vmax.f32 %v1320_v2, 0.0  ;;  %v1322_v9 = vadd.f32 %v1321_v4, %v2664_v26  ;;  %1829 = vadd.xlane.f32.xlu0 %v1828_v3 }
 0x22f   : > { %v1323_v10 = vpop.f32.mrf.mxu1 }
 0x230   : > { %v1531_v11 = vmax.f32 %v1322_v9, 0.0  ;;  %v1324_v12 = vadd.f32 %v1323_v10, %v2660_v23  ;;  %v1831_v13 = vadd.f32 %v1669_v7, %v1668_v5  ;;  %v1670_v60 = vmul.f32 %v2672_v35, %v1530_v8 }
 0x231   : > { %v1325_v6 = vpop.f32.mrf.mxu1 }
 0x232   : > { %v1671_v14 = vmul.f32 %v2674_v36, %v1531_v11  ;;  %v1532_v15 = vmax.f32 %v1324_v12, 0.0  ;;  %v1326_v16 = vadd.f32 %v1325_v6, %v2664_v26  ;;  %1832 = vadd.xlane.f32.xlu1 %v1831_v13 }
 0x233   : > { %v1329_v17 = vpop.f32.mrf.mxu1 }
 0x234   : > { %v1533_v18 = vmax.f32 %v1326_v16, 0.0  ;;  %v1330_v19 = vadd.f32 %v1329_v17, %v2660_v23  ;;  %v1834_v21 = vadd.f32 %v1671_v14, %v1670_v60  ;;  %v1672_v24 = vmul.f32 %v2672_v35, %v1532_v15  ;;  %v2857_v16 = vld [vmem:[#allocation2] ss:$0 sm:$0xff] }
 0x235   : > { %v1331_v22 = vpop.f32.mrf.mxu1 }
 0x236   : > { %v1673_v20 = vmul.f32 %v2674_v36, %v1533_v18  ;;  %v1534_v25 = vmax.f32 %v1330_v19, 0.0  ;;  %v1332_v47 = vadd.f32 %v1331_v22, %v2664_v26  ;;  %1835 = vadd.xlane.f32.xlu0 %v1834_v21 }
 0x237   : > { %v1333_v27 = vpop.f32.mrf.mxu1 }
 0x238   : > { %v1535_v28 = vmax.f32 %v1332_v47, 0.0  ;;  %v1334_v29 = vadd.f32 %v1333_v27, %v2660_v23  ;;  %v1837_v30 = vadd.f32 %v1673_v20, %v1672_v24  ;;  %v1674_v32 = vmul.f32 %v2672_v35, %v1534_v25 }
 0x239   : > { %v1335_v31 = vpop.f32.mrf.mxu1 }
 0x23a   : > { %v1675_v33 = vmul.f32 %v2674_v36, %v1535_v28  ;;  %v1536_v34 = vmax.f32 %v1334_v29, 0.0  ;;  %v1336_v37 = vadd.f32 %v1335_v31, %v2664_v26  ;;  %1838 = vadd.xlane.f32.xlu1 %v1837_v30 }
 0x23b   : > { %v1339_v38 = vpop.f32.mrf.mxu1 }
 0x23c   : > { %v1537_v39 = vmax.f32 %v1336_v37, 0.0  ;;  %v1340_v40 = vadd.f32 %v1339_v38, %v2660_v23  ;;  %v1840_v41 = vadd.f32 %v1675_v33, %v1674_v32  ;;  %v1676_v43 = vmul.f32 %v2672_v35, %v1536_v34 }
 0x23d   : > { %v1341_v42 = vpop.f32.mrf.mxu1 }
 0x23e   : > { %v1677_v44 = vmul.f32 %v2674_v36, %v1537_v39  ;;  %v1538_v45 = vmax.f32 %v1340_v40, 0.0  ;;  %v1342_v46 = vadd.f32 %v1341_v42, %v2664_v26  ;;  %1841 = vadd.xlane.f32.xlu0 %v1840_v41 }
 0x23f   : > { %v1343_v48 = vpop.f32.mrf.mxu1 }
 0x240   : > { %v1539_v49 = vmax.f32 %v1342_v46, 0.0  ;;  %v1344_v50 = vadd.f32 %v1343_v48, %v2660_v23  ;;  %v1843_v51 = vadd.f32 %v1677_v44, %v1676_v43  ;;  %v1678_v53 = vmul.f32 %v2672_v35, %v1538_v45 }
 0x241   : > { %v1345_v52 = vpop.f32.mrf.mxu1 }
 0x242   : > { %v1679_v54 = vmul.f32 %v2674_v36, %v1539_v49  ;;  %v1540_v55 = vmax.f32 %v1344_v50, 0.0  ;;  %v1346_v56 = vadd.f32 %v1345_v52, %v2664_v26  ;;  %1844 = vadd.xlane.f32.xlu1 %v1843_v51 }
 0x243   : > { %v1349_v57 = vpop.f32.mrf.mxu1 }
 0x244   : > { %v1541_v58 = vmax.f32 %v1346_v56, 0.0  ;;  %v1350_v59 = vadd.f32 %v1349_v57, %v2660_v23  ;;  %v1846_v61 = vadd.f32 %v1679_v54, %v1678_v53  ;;  %v1680_v63 = vmul.f32 %v2672_v35, %v1540_v55 }
 0x245   : > { %v1351_v62 = vpop.f32.mrf.mxu1 }
 0x246   : > { %v1681_v0 = vmul.f32 %v2674_v36, %v1541_v58  ;;  %v1542_v1 = vmax.f32 %v1350_v59, 0.0  ;;  %v1352_v2 = vadd.f32 %v1351_v62, %v2664_v26  ;;  %1847 = vadd.xlane.f32.xlu0 %v1846_v61 }
 0x247   : > { %v1353_v3 = vpop.f32.mrf.mxu1 }
 0x248   : > { %v1543_v4 = vmax.f32 %v1352_v2, 0.0  ;;  %v1354_v5 = vadd.f32 %v1353_v3, %v2660_v23  ;;  %v1849_v7 = vadd.f32 %v1681_v0, %v1680_v63  ;;  %v1682_v9 = vmul.f32 %v2672_v35, %v1542_v1 }
 0x249   : > { %v1355_v8 = vpop.f32.mrf.mxu1 }
 0x24a   : > { %v1683_v10 = vmul.f32 %v2674_v36, %v1543_v4  ;;  %v1356_v11 = vadd.f32 %v1355_v8, %v2664_v26  ;;  %1850 = vadd.xlane.f32.xlu1 %v1849_v7  ;;  %v1544_v12 = vmax.f32 %v1354_v5, 0.0 }
 0x24b   : > { %v1359_v13 = vpop.f32.mrf.mxu1 }
 0x24c   : > { %v1545_v6 = vmax.f32 %v1356_v11, 0.0  ;;  %v1360_v60 = vadd.f32 %v1359_v13, %v2660_v23  ;;  %v1852_v14 = vadd.f32 %v1683_v10, %v1682_v9  ;;  %v1684_v19 = vmul.f32 %v2672_v35, %v1544_v12 }
 0x24d   : > { %v1361_v15 = vpop.f32.mrf.mxu1 }
 0x24e   : > { %v1685_v17 = vmul.f32 %v2674_v36, %v1545_v6  ;;  %v1362_v18 = vadd.f32 %v1361_v15, %v2664_v26  ;;  %1853 = vadd.xlane.f32.xlu0 %v1852_v14  ;;  %v1546_v21 = vmax.f32 %v1360_v60, 0.0 }
 0x24f   : > { %v1363_v22 = vpop.f32.mrf.mxu1  ;;  %v1728_v24 = vpop.xlane.xlu0 %1727 }
 0x250   : > { %v1547_v20 = vmax.f32 %v1362_v18, 0.0  ;;  %v1364_v25 = vadd.f32 %v1363_v22, %v2660_v23  ;;  %v1925_v47 = vadd.f32 %v2857_v16, %v1728_v24  ;;  %v1855_v28 = vadd.f32 %v1685_v17, %v1684_v19 }
 0x251   : > { %v1365_v27 = vpop.f32.mrf.mxu1  ;;  %v1686_v31 = vmul.f32 %v2672_v35, %v1546_v21 }
 0x252   : > { %v1687_v29 = vmul.f32 %v2674_v36, %v1547_v20  ;;  %1990 = vst.msk [vmem:[%s2865_s23] sm:$0xff] %vm1989_vm0, %v1925_v47  ;;  %v1366_v30 = vadd.f32 %v1365_v27, %v2664_v26  ;;  %v1548_v32 = vmax.f32 %v1364_v25, 0.0  ;;  %1856 = vadd.xlane.f32.xlu1 %v1855_v28 }
 0x253   : > { %v1369_v33 = vpop.f32.mrf.mxu1  ;;  %v1731_v34 = vpop.xlane.xlu0 %1730 }
 0x254   : > { %v1549_v37 = vmax.f32 %v1366_v30, 0.0  ;;  %v1370_v38 = vadd.f32 %v1369_v33, %v2660_v23  ;;  %v1926_v39 = vadd.f32 %v2857_v16, %v1731_v34  ;;  %v1858_v41 = vadd.f32 %v1687_v29, %v1686_v31 }
 0x255   : > { %v1371_v40 = vpop.f32.mrf.mxu1  ;;  %v1688_v44 = vmul.f32 %v2672_v35, %v1548_v32 }
 0x256   : > { %v1689_v42 = vmul.f32 %v2674_v36, %v1549_v37  ;;  %1991 = vst.msk [vmem:[%s2865_s23 + $0x8] sm:$0xff] %vm1989_vm0, %v1926_v39  ;;  %v1372_v43 = vadd.f32 %v1371_v40, %v2664_v26  ;;  %v1550_v45 = vmax.f32 %v1370_v38, 0.0  ;;  %1859 = vadd.xlane.f32.xlu0 %v1858_v41 }
 0x257   : > { %v1373_v46 = vpop.f32.mrf.mxu1  ;;  %v1734_v48 = vpop.xlane.xlu1 %1733 }
 0x258   : > { %v1551_v49 = vmax.f32 %v1372_v43, 0.0  ;;  %v1374_v50 = vadd.f32 %v1373_v46, %v2660_v23  ;;  %v1927_v51 = vadd.f32 %v2857_v16, %v1734_v48  ;;  %v1861_v53 = vadd.f32 %v1689_v42, %v1688_v44 }
 0x259   : > { %v1375_v52 = vpop.f32.mrf.mxu1  ;;  %v1690_v56 = vmul.f32 %v2672_v35, %v1550_v45 }
 0x25a   : > { %v1691_v54 = vmul.f32 %v2674_v36, %v1551_v49  ;;  %1992 = vst.msk [vmem:[%s2865_s23 + $0x10] sm:$0xff] %vm1989_vm0, %v1927_v51  ;;  %v1376_v55 = vadd.f32 %v1375_v52, %v2664_v26  ;;  %v1552_v57 = vmax.f32 %v1374_v50, 0.0  ;;  %1862 = vadd.xlane.f32.xlu1 %v1861_v53 }
 0x25b   : > { %v1379_v58 = vpop.f32.mrf.mxu1  ;;  %v1737_v59 = vpop.xlane.xlu1 %1736 }
 0x25c   : > { %v1553_v61 = vmax.f32 %v1376_v55, 0.0  ;;  %v1380_v62 = vadd.f32 %v1379_v58, %v2660_v23  ;;  %v1928_v63 = vadd.f32 %v2857_v16, %v1737_v59  ;;  %v1864_v1 = vadd.f32 %v1691_v54, %v1690_v56 }
 0x25d   : > { %v1381_v0 = vpop.f32.mrf.mxu1  ;;  %v1692_v4 = vmul.f32 %v2672_v35, %v1552_v57 }
 0x25e   : > { %v1693_v2 = vmul.f32 %v2674_v36, %v1553_v61  ;;  %1993 = vst.msk [vmem:[%s2865_s23 + $0x18] sm:$0xff] %vm1989_vm0, %v1928_v63  ;;  %v1382_v3 = vadd.f32 %v1381_v0, %v2664_v26  ;;  %v1554_v5 = vmax.f32 %v1380_v62, 0.0  ;;  %1865 = vadd.xlane.f32.xlu0 %v1864_v1 }
 0x25f   : > { %v1383_v7 = vpop.f32.mrf.mxu1  ;;  %v1740_v8 = vpop.xlane.xlu0 %1739 }
 0x260   : > { %v1555_v9 = vmax.f32 %v1382_v3, 0.0  ;;  %v1384_v10 = vadd.f32 %v1383_v7, %v2660_v23  ;;  %v1929_v11 = vadd.f32 %v2857_v16, %v1740_v8  ;;  %v1867_v13 = vadd.f32 %v1693_v2, %v1692_v4 }
 0x261   : > { %v1385_v12 = vpop.f32.mrf.mxu1  ;;  %v1694_v15 = vmul.f32 %v2672_v35, %v1554_v5 }
 0x262   : > { %v1695_v6 = vmul.f32 %v2674_v36, %v1555_v9  ;;  %v1556_v60 = vmax.f32 %v1384_v10, 0.0  ;;  %1994 = vst.msk [vmem:[%s2865_s23 + $0x20] sm:$0xff] %vm1989_vm0, %v1929_v11  ;;  %v1386_v14 = vadd.f32 %v1385_v12, %v2664_v26  ;;  %1868 = vadd.xlane.f32.xlu1 %v1867_v13 }
 0x263   : > { %v1389_v17 = vpop.f32.mrf.mxu1  ;;  %v1743_v18 = vpop.xlane.xlu1 %1742 }
 0x264   : > { %v1557_v19 = vmax.f32 %v1386_v14, 0.0  ;;  %v1390_v21 = vadd.f32 %v1389_v17, %v2660_v23  ;;  %v1930_v22 = vadd.f32 %v2857_v16, %v1743_v18  ;;  %v1870_v20 = vadd.f32 %v1695_v6, %v1694_v15 }
 0x265   : > { %v1391_v24 = vpop.f32.mrf.mxu1  ;;  %v1696_v25 = vmul.f32 %v2672_v35, %v1556_v60 }
 0x266   : > { %v1697_v47 = vmul.f32 %v2674_v36, %v1557_v19  ;;  %v1558_v27 = vmax.f32 %v1390_v21, 0.0  ;;  %1995 = vst.msk [vmem:[%s2865_s23 + $0x28] sm:$0xff] %vm1989_vm0, %v1930_v22  ;;  %v1392_v28 = vadd.f32 %v1391_v24, %v2664_v26  ;;  %1871 = vadd.xlane.f32.xlu0 %v1870_v20 }
 0x267   : > { %v1393_v29 = vpop.f32.mrf.mxu1  ;;  %v1746_v32 = vpop.xlane.xlu0 %1745 }
 0x268   : > { %v1559_v30 = vmax.f32 %v1392_v28, 0.0  ;;  %v1394_v31 = vadd.f32 %v1393_v29, %v2660_v23  ;;  %v1873_v33 = vadd.f32 %v1697_v47, %v1696_v25  ;;  %v1931_v34 = vadd.f32 %v2857_v16, %v1746_v32 }
 0x269   : > { %v1395_v37 = vpop.f32.mrf.mxu1  ;;  %v1698_v38 = vmul.f32 %v2672_v35, %v1558_v27 }
 0x26a   : > { %v1699_v39 = vmul.f32 %v2674_v36, %v1559_v30  ;;  %v1560_v40 = vmax.f32 %v1394_v31, 0.0  ;;  %v1396_v41 = vadd.f32 %v1395_v37, %v2664_v26  ;;  %1874 = vadd.xlane.f32.xlu1 %v1873_v33  ;;  %1996 = vst.msk [vmem:[%s2865_s23 + $0x30] sm:$0xff] %vm1989_vm0, %v1931_v34 }
 0x26b   : > { %v1399_v42 = vpop.f32.mrf.mxu1  ;;  %v1749_v45 = vpop.xlane.xlu1 %1748 }
 0x26c   : > { %v1561_v43 = vmax.f32 %v1396_v41, 0.0  ;;  %v1400_v44 = vadd.f32 %v1399_v42, %v2660_v23  ;;  %v1876_v46 = vadd.f32 %v1699_v39, %v1698_v38  ;;  %v1932_v48 = vadd.f32 %v2857_v16, %v1749_v45 }
 0x26d   : > { %v1401_v49 = vpop.f32.mrf.mxu1  ;;  %v1700_v50 = vmul.f32 %v2672_v35, %v1560_v40 }
 0x26e   : > { %v1701_v51 = vmul.f32 %v2674_v36, %v1561_v43  ;;  %v1562_v52 = vmax.f32 %v1400_v44, 0.0  ;;  %v1402_v53 = vadd.f32 %v1401_v49, %v2664_v26  ;;  %1877 = vadd.xlane.f32.xlu0 %v1876_v46  ;;  %1997 = vst.msk [vmem:[%s2865_s23 + $0x38] sm:$0xff] %vm1989_vm0, %v1932_v48 }
 0x26f   : > { %v1403_v54 = vpop.f32.mrf.mxu1  ;;  %v1752_v57 = vpop.xlane.xlu0 %1751 }
 0x270   : > { %v1563_v55 = vmax.f32 %v1402_v53, 0.0  ;;  %v1404_v56 = vadd.f32 %v1403_v54, %v2660_v23  ;;  %v1879_v58 = vadd.f32 %v1701_v51, %v1700_v50  ;;  %v1933_v59 = vadd.f32 %v2857_v16, %v1752_v57 }
 0x271   : > { %v1405_v61 = vpop.f32.mrf.mxu1  ;;  %v1702_v62 = vmul.f32 %v2672_v35, %v1562_v52 }
 0x272   : > { %v1703_v63 = vmul.f32 %v2674_v36, %v1563_v55  ;;  %v1564_v0 = vmax.f32 %v1404_v56, 0.0  ;;  %v1406_v1 = vadd.f32 %v1405_v61, %v2664_v26  ;;  %1880 = vadd.xlane.f32.xlu1 %v1879_v58  ;;  %1998 = vst.msk [vmem:[%s2865_s23 + $0x40] sm:$0xff] %vm1989_vm0, %v1933_v59 }
 0x273   : > { %v1409_v2 = vpop.f32.mrf.mxu1  ;;  %v1755_v5 = vpop.xlane.xlu1 %1754 }
 0x274   : > { %v1565_v3 = vmax.f32 %v1406_v1, 0.0  ;;  %v1410_v4 = vadd.f32 %v1409_v2, %v2660_v23  ;;  %v1776_v7 = vpop.xlane.xlu0 %1775  ;;  %v1882_v8 = vadd.f32 %v1703_v63, %v1702_v62  ;;  %v1934_v9 = vadd.f32 %v2857_v16, %v1755_v5 }
 0x275   : > { %v1941_v10 = vadd.f32 %v2857_v16, %v1776_v7  ;;  %v1411_v11 = vpop.f32.mrf.mxu1  ;;  %v1704_v12 = vmul.f32 %v2672_v35, %v1564_v0 }
 0x276   : > { %v1705_v13 = vmul.f32 %v2674_v36, %v1565_v3  ;;  %v1566_v6 = vmax.f32 %v1410_v4, 0.0  ;;  %v1412_v60 = vadd.f32 %v1411_v11, %v2664_v26  ;;  %1883 = vadd.xlane.f32.xlu0 %v1882_v8  ;;  %1999 = vst.msk [vmem:[%s2865_s23 + $0x48] sm:$0xff] %vm1989_vm0, %v1934_v9 }
 0x277   : > { %2006 = vst.msk [vmem:[%s2865_s23 + $0x80] sm:$0xff] %vm1989_vm0, %v1941_v10  ;;  %v1413_v14 = vpop.f32.mrf.mxu1  ;;  %v1779_v18 = vpop.xlane.xlu1 %1778 }
 0x278   : > { %v1567_v15 = vmax.f32 %v1412_v60, 0.0  ;;  %v1414_v17 = vadd.f32 %v1413_v14, %v2660_v23  ;;  %v1758_v19 = vpop.xlane.xlu0 %1757  ;;  %v1885_v21 = vadd.f32 %v1705_v13, %v1704_v12  ;;  %v1942_v22 = vadd.f32 %v2857_v16, %v1779_v18 }
 0x279   : > { %v1935_v24 = vadd.f32 %v2857_v16, %v1758_v19  ;;  %v1415_v20 = vpop.f32.mrf.mxu1  ;;  %v1706_v25 = vmul.f32 %v2672_v35, %v1566_v6 }
 0x27a   : > { %v1707_v47 = vmul.f32 %v2674_v36, %v1567_v15  ;;  %v1568_v27 = vmax.f32 %v1414_v17, 0.0  ;;  %v1416_v28 = vadd.f32 %v1415_v20, %v2664_v26  ;;  %1886 = vadd.xlane.f32.xlu1 %v1885_v21  ;;  %2007 = vst.msk [vmem:[%s2865_s23 + $0x88] sm:$0xff] %vm1989_vm0, %v1942_v22 }
 0x27b   : > { %2000 = vst.msk [vmem:[%s2865_s23 + $0x50] sm:$0xff] %vm1989_vm0, %v1935_v24  ;;  %v1419_v29 = vpop.f32.mrf.mxu1  ;;  %v1761_v32 = vpop.xlane.xlu1 %1760 }
 0x27c   : > { %v1569_v30 = vmax.f32 %v1416_v28, 0.0  ;;  %v1420_v31 = vadd.f32 %v1419_v29, %v2660_v23  ;;  %v1782_v33 = vpop.xlane.xlu0 %1781  ;;  %v1888_v34 = vadd.f32 %v1707_v47, %v1706_v25  ;;  %v1936_v37 = vadd.f32 %v2857_v16, %v1761_v32 }
 0x27d   : > { %v1943_v38 = vadd.f32 %v2857_v16, %v1782_v33  ;;  %v1421_v39 = vpop.f32.mrf.mxu1  ;;  %v1708_v40 = vmul.f32 %v2672_v35, %v1568_v27 }
 0x27e   : > { %v1709_v41 = vmul.f32 %v2674_v36, %v1569_v30  ;;  %v1570_v42 = vmax.f32 %v1420_v31, 0.0  ;;  %v1422_v43 = vadd.f32 %v1421_v39, %v2664_v26  ;;  %1889 = vadd.xlane.f32.xlu0 %v1888_v34  ;;  %2001 = vst.msk [vmem:[%s2865_s23 + $0x58] sm:$0xff] %vm1989_vm0, %v1936_v37 }
 0x27f   : > { %2008 = vst.msk [vmem:[%s2865_s23 + $0x90] sm:$0xff] %vm1989_vm0, %v1943_v38  ;;  %v1423_v44 = vpop.f32.mrf.mxu1  ;;  %v1785_v48 = vpop.xlane.xlu1 %1784 }
 0x280   : > { %v1571_v45 = vmax.f32 %v1422_v43, 0.0  ;;  %v1424_v46 = vadd.f32 %v1423_v44, %v2660_v23  ;;  %v1764_v49 = vpop.xlane.xlu0 %1763  ;;  %v1891_v50 = vadd.f32 %v1709_v41, %v1708_v40  ;;  %v1944_v51 = vadd.f32 %v2857_v16, %v1785_v48 }
 0x281   : > { %v1937_v52 = vadd.f32 %v2857_v16, %v1764_v49  ;;  %v1425_v53 = vpop.f32.mrf.mxu1  ;;  %v1710_v54 = vmul.f32 %v2672_v35, %v1570_v42 }
 0x282   : > { %v1711_v55 = vmul.f32 %v2674_v36, %v1571_v45  ;;  %v1572_v56 = vmax.f32 %v1424_v46, 0.0  ;;  %v1426_v57 = vadd.f32 %v1425_v53, %v2664_v26  ;;  %1892 = vadd.xlane.f32.xlu1 %v1891_v50  ;;  %2009 = vst.msk [vmem:[%s2865_s23 + $0x98] sm:$0xff] %vm1989_vm0, %v1944_v51 }
 0x283   : > { %2002 = vst.msk [vmem:[%s2865_s23 + $0x60] sm:$0xff] %vm1989_vm0, %v1937_v52  ;;  %v1429_v58 = vpop.f32.mrf.mxu1  ;;  %v1767_v62 = vpop.xlane.xlu1 %1766 }
 0x284   : > { %v1573_v59 = vmax.f32 %v1426_v57, 0.0  ;;  %v1430_v61 = vadd.f32 %v1429_v58, %v2660_v23  ;;  %v1788_v63 = vpop.xlane.xlu0 %1787  ;;  %v1894_v0 = vadd.f32 %v1711_v55, %v1710_v54  ;;  %v1938_v1 = vadd.f32 %v2857_v16, %v1767_v62 }
 0x285   : > { %v1945_v2 = vadd.f32 %v2857_v16, %v1788_v63  ;;  %v1431_v3 = vpop.f32.mrf.mxu1  ;;  %v1712_v4 = vmul.f32 %v2672_v35, %v1572_v56 }
 0x286   : > { %v1713_v5 = vmul.f32 %v2674_v36, %v1573_v59  ;;  %v1574_v7 = vmax.f32 %v1430_v61, 0.0  ;;  %v1432_v8 = vadd.f32 %v1431_v3, %v2664_v26  ;;  %1895 = vadd.xlane.f32.xlu0 %v1894_v0  ;;  %2003 = vst.msk [vmem:[%s2865_s23 + $0x68] sm:$0xff] %vm1989_vm0, %v1938_v1 }
 0x287   : > { %2010 = vst.msk [vmem:[%s2865_s23 + $0xa0] sm:$0xff] %vm1989_vm0, %v1945_v2  ;;  %v1433_v9 = vpop.f32.mrf.mxu1  ;;  %v1791_v12 = vpop.xlane.xlu1 %1790 }
 0x288   : > { %v1575_v10 = vmax.f32 %v1432_v8, 0.0  ;;  %v1434_v11 = vadd.f32 %v1433_v9, %v2660_v23  ;;  %v1770_v13 = vpop.xlane.xlu0 %1769  ;;  %v1897_v6 = vadd.f32 %v1713_v5, %v1712_v4  ;;  %v1946_v60 = vadd.f32 %v2857_v16, %v1791_v12 }
 0x289   : > { %v1939_v14 = vadd.f32 %v2857_v16, %v1770_v13  ;;  %v1435_v15 = vpop.f32.mrf.mxu1  ;;  %v1714_v17 = vmul.f32 %v2672_v35, %v1574_v7 }
 0x28a   : > { %v1715_v18 = vmul.f32 %v2674_v36, %v1575_v10  ;;  %v1576_v19 = vmax.f32 %v1434_v11, 0.0  ;;  %v1436_v21 = vadd.f32 %v1435_v15, %v2664_v26  ;;  %1898 = vadd.xlane.f32.xlu1 %v1897_v6  ;;  %2011 = vst.msk [vmem:[%s2865_s23 + $0xa8] sm:$0xff] %vm1989_vm0, %v1946_v60 }
 0x28b   : > { %2004 = vst.msk [vmem:[%s2865_s23 + $0x70] sm:$0xff] %vm1989_vm0, %v1939_v14  ;;  %v1439_v22 = vpop.f32.mrf.mxu1  ;;  %v1773_v25 = vpop.xlane.xlu1 %1772 }
 0x28c   : > { %v1577_v24 = vmax.f32 %v1436_v21, 0.0  ;;  %v1440_v20 = vadd.f32 %v1439_v22, %v2660_v23  ;;  %v1794_v47 = vpop.xlane.xlu0 %1793  ;;  %v1900_v27 = vadd.f32 %v1715_v18, %v1714_v17  ;;  %v1940_v28 = vadd.f32 %v2857_v16, %v1773_v25 }
 0x28d   : > { %v1947_v29 = vadd.f32 %v2857_v16, %v1794_v47  ;;  %v1441_v30 = vpop.f32.mrf.mxu1  ;;  %v1716_v31 = vmul.f32 %v2672_v35, %v1576_v19 }
 0x28e   : > { %v1717_v32 = vmul.f32 %v2674_v36, %v1577_v24  ;;  %v1578_v33 = vmax.f32 %v1440_v20, 0.0  ;;  %v1442_v34 = vadd.f32 %v1441_v30, %v2664_v26  ;;  %1901 = vadd.xlane.f32.xlu0 %v1900_v27  ;;  %2005 = vst.msk [vmem:[%s2865_s23 + $0x78] sm:$0xff] %vm1989_vm0, %v1940_v28 }
 0x28f   : > { %2012 = vst.msk [vmem:[%s2865_s23 + $0xb0] sm:$0xff] %vm1989_vm0, %v1947_v29  ;;  %v1443_v37 = vpop.f32.mrf.mxu1  ;;  %v1797_v40 = vpop.xlane.xlu1 %1796 }
 0x290   : > { %v1579_v38 = vmax.f32 %v1442_v34, 0.0  ;;  %v1444_v39 = vadd.f32 %v1443_v37, %v2660_v23  ;;  %v1800_v41 = vpop.xlane.xlu0 %1799  ;;  %v1903_v42 = vadd.f32 %v1717_v32, %v1716_v31  ;;  %v1948_v43 = vadd.f32 %v2857_v16, %v1797_v40 }
 0x291   : > { %v1949_v44 = vadd.f32 %v2857_v16, %v1800_v41  ;;  %v1445_v45 = vpop.f32.mrf.mxu1  ;;  %v1718_v46 = vmul.f32 %v2672_v35, %v1578_v33 }
 0x292   : > { %v1719_v48 = vmul.f32 %v2674_v36, %v1579_v38  ;;  %v1446_v49 = vadd.f32 %v1445_v45, %v2664_v26  ;;  %1904 = vadd.xlane.f32.xlu1 %v1903_v42  ;;  %v1580_v50 = vmax.f32 %v1444_v39, 0.0  ;;  %2013 = vst.msk [vmem:[%s2865_s23 + $0xb8] sm:$0xff] %vm1989_vm0, %v1948_v43 }
 0x293   : > { %2014 = vst.msk [vmem:[%s2865_s23 + $0xc0] sm:$0xff] %vm1989_vm0, %v1949_v44  ;;  %v1449_v51 = vpop.f32.mrf.mxu1  ;;  %v1803_v54 = vpop.xlane.xlu1 %1802 }
 0x294   : > { %v1581_v52 = vmax.f32 %v1446_v49, 0.0  ;;  %v1450_v53 = vadd.f32 %v1449_v51, %v2660_v23  ;;  %v1906_v55 = vadd.f32 %v1719_v48, %v1718_v46  ;;  %v1950_v56 = vadd.f32 %v2857_v16, %v1803_v54 }
 0x295   : > { %v1451_v57 = vpop.f32.mrf.mxu1  ;;  %v1720_v62 = vmul.f32 %v2672_v35, %v1580_v50 }
 0x296   : > { %v1721_v58 = vmul.f32 %v2674_v36, %v1581_v52  ;;  %v1582_v59 = vmax.f32 %v1450_v53, 0.0  ;;  %v1452_v61 = vadd.f32 %v1451_v57, %v2664_v26  ;;  %1907 = vadd.xlane.f32.xlu0 %v1906_v55  ;;  %2015 = vst.msk [vmem:[%s2865_s23 + $0xc8] sm:$0xff] %vm1989_vm0, %v1950_v56 }
 0x297   : > { %v1453_v63 = vpop.f32.mrf.mxu1  ;;  %v1806_v0 = vpop.xlane.xlu0 %1805 }
 0x298   : > { %v1583_v1 = vmax.f32 %v1452_v61, 0.0  ;;  %v1454_v2 = vadd.f32 %v1453_v63, %v2660_v23  ;;  %v1951_v3 = vadd.f32 %v2857_v16, %v1806_v0  ;;  %v1909_v5 = vadd.f32 %v1721_v58, %v1720_v62 }
 0x299   : > { %v1455_v4 = vpop.f32.mrf.mxu1  ;;  %v1722_v7 = vmul.f32 %v2672_v35, %v1582_v59 }
 0x29a   : > { %v1723_v8 = vmul.f32 %v2674_v36, %v1583_v1  ;;  %v1584_v9 = vmax.f32 %v1454_v2, 0.0  ;;  %2016 = vst.msk [vmem:[%s2865_s23 + $0xd0] sm:$0xff] %vm1989_vm0, %v1951_v3  ;;  %v1456_v10 = vadd.f32 %v1455_v4, %v2664_v26  ;;  %1910 = vadd.xlane.f32.xlu1 %v1909_v5 }
 0x29b   : > { %v1809_v11 = vpop.xlane.xlu1 %1808 }
 0x29c   : > { %v1585_v12 = vmax.f32 %v1456_v10, 0.0  ;;  %v1952_v23 = vadd.f32 %v2857_v16, %v1809_v11  ;;  %v1912_v13 = vadd.f32 %v1723_v8, %v1722_v7  ;;  %v1724_v6 = vmul.f32 %v2672_v35, %v1584_v9 }
 0x29e   : > { %v1725_v60 = vmul.f32 %v2674_v36, %v1585_v12  ;;  %2017 = vst.msk [vmem:[%s2865_s23 + $0xd8] sm:$0xff] %vm1989_vm0, %v1952_v23  ;;  %1913 = vadd.xlane.f32.xlu0 %v1912_v13 }
 0x29f   : > { %v1812_v14 = vpop.xlane.xlu0 %1811 }
 0x2a0   : > { %v1953_v26 = vadd.f32 %v2857_v16, %v1812_v14  ;;  %v1915_v15 = vadd.f32 %v1725_v60, %v1724_v6 }
 0x2a2   : > { %2018 = vst.msk [vmem:[%s2865_s23 + $0xe0] sm:$0xff] %vm1989_vm0, %v1953_v26  ;;  %1916 = vadd.xlane.f32.xlu1 %v1915_v15 }
 0x2a3   : > { %v1815_v17 = vpop.xlane.xlu1 %1814 }
 0x2a4   : > { %v1954_v18 = vadd.f32 %v2857_v16, %v1815_v17 }
 0x2a6   : > { %2019 = vst.msk [vmem:[%s2865_s23 + $0xe8] sm:$0xff] %vm1989_vm0, %v1954_v18 }
 0x2a7   : > { %v1818_v35 = vpop.xlane.xlu0 %1817 }
 0x2a8   : > { %v1955_v36 = vadd.f32 %v2857_v16, %v1818_v35 }
 0x2aa   : > { %2020 = vst.msk [vmem:[%s2865_s23 + $0xf0] sm:$0xff] %vm1989_vm0, %v1955_v36 }
 0x2ab   : > { %v1821_v19 = vpop.xlane.xlu1 %1820 }
 0x2ac   : > { %v1956_v21 = vadd.f32 %v2857_v16, %v1821_v19 }
 0x2ae   : > { %2021 = vst.msk [vmem:[%s2865_s23 + $0xf8] sm:$0xff] %vm1989_vm0, %v1956_v21 }
 0x2af   : > { %v1824_v22 = vpop.xlane.xlu0 %1823 }
 0x2b0   : > { %v1957_v24 = vadd.f32 %v2857_v16, %v1824_v22 }
 0x2b2   : > { %2022 = vst.msk [vmem:[%s2865_s23 + $0x100] sm:$0xff] %vm1989_vm0, %v1957_v24 }
 0x2b3   : > { %v1827_v20 = vpop.xlane.xlu1 %1826 }
 0x2b4   : > { %v1958_v25 = vadd.f32 %v2857_v16, %v1827_v20 }
 0x2b6   : > { %2023 = vst.msk [vmem:[%s2865_s23 + $0x108] sm:$0xff] %vm1989_vm0, %v1958_v25 }
 0x2b7   : > { %v1830_v47 = vpop.xlane.xlu0 %1829 }
 0x2b8   : > { %v1959_v27 = vadd.f32 %v2857_v16, %v1830_v47 }
 0x2ba   : > { %2024 = vst.msk [vmem:[%s2865_s23 + $0x110] sm:$0xff] %vm1989_vm0, %v1959_v27 }
 0x2bb   : > { %v1833_v28 = vpop.xlane.xlu1 %1832 }
 0x2bc   : > { %v1960_v29 = vadd.f32 %v2857_v16, %v1833_v28 }
 0x2be   : > { %2025 = vst.msk [vmem:[%s2865_s23 + $0x118] sm:$0xff] %vm1989_vm0, %v1960_v29 }
 0x2bf   : > { %v1836_v30 = vpop.xlane.xlu0 %1835 }
 0x2c0   : > { %v1961_v31 = vadd.f32 %v2857_v16, %v1836_v30 }
 0x2c2   : > { %2026 = vst.msk [vmem:[%s2865_s23 + $0x120] sm:$0xff] %vm1989_vm0, %v1961_v31 }
 0x2c3   : > { %v1839_v32 = vpop.xlane.xlu1 %1838 }
 0x2c4   : > { %v1962_v33 = vadd.f32 %v2857_v16, %v1839_v32 }
 0x2c6   : > { %2027 = vst.msk [vmem:[%s2865_s23 + $0x128] sm:$0xff] %vm1989_vm0, %v1962_v33 }
 0x2c7   : > { %v1842_v34 = vpop.xlane.xlu0 %1841 }
 0x2c8   : > { %v1963_v37 = vadd.f32 %v2857_v16, %v1842_v34 }
 0x2ca   : > { %2028 = vst.msk [vmem:[%s2865_s23 + $0x130] sm:$0xff] %vm1989_vm0, %v1963_v37 }
 0x2cb   : > { %v1845_v38 = vpop.xlane.xlu1 %1844 }
 0x2cc   : > { %v1964_v39 = vadd.f32 %v2857_v16, %v1845_v38 }
 0x2ce   : > { %2029 = vst.msk [vmem:[%s2865_s23 + $0x138] sm:$0xff] %vm1989_vm0, %v1964_v39 }
 0x2cf   : > { %v1848_v40 = vpop.xlane.xlu0 %1847 }
 0x2d0   : > { %v1965_v41 = vadd.f32 %v2857_v16, %v1848_v40 }
 0x2d2   : > { %2030 = vst.msk [vmem:[%s2865_s23 + $0x140] sm:$0xff] %vm1989_vm0, %v1965_v41 }
 0x2d3   : > { %v1851_v42 = vpop.xlane.xlu1 %1850 }
 0x2d4   : > { %v1966_v43 = vadd.f32 %v2857_v16, %v1851_v42 }
 0x2d6   : > { %2031 = vst.msk [vmem:[%s2865_s23 + $0x148] sm:$0xff] %vm1989_vm0, %v1966_v43 }
 0x2d7   : > { %v1854_v44 = vpop.xlane.xlu0 %1853 }
 0x2d8   : > { %v1967_v45 = vadd.f32 %v2857_v16, %v1854_v44 }
 0x2da   : > { %2032 = vst.msk [vmem:[%s2865_s23 + $0x150] sm:$0xff] %vm1989_vm0, %v1967_v45 }
 0x2db   : > { %v1857_v46 = vpop.xlane.xlu1 %1856 }
 0x2dc   : > { %v1968_v48 = vadd.f32 %v2857_v16, %v1857_v46 }
 0x2de   : > { %2033 = vst.msk [vmem:[%s2865_s23 + $0x158] sm:$0xff] %vm1989_vm0, %v1968_v48 }
 0x2df   : > { %v1860_v49 = vpop.xlane.xlu0 %1859 }
 0x2e0   : > { %v1969_v50 = vadd.f32 %v2857_v16, %v1860_v49 }
 0x2e2   : > { %2034 = vst.msk [vmem:[%s2865_s23 + $0x160] sm:$0xff] %vm1989_vm0, %v1969_v50 }
 0x2e3   : > { %v1863_v51 = vpop.xlane.xlu1 %1862 }
 0x2e4   : > { %v1970_v52 = vadd.f32 %v2857_v16, %v1863_v51 }
 0x2e6   : > { %2035 = vst.msk [vmem:[%s2865_s23 + $0x168] sm:$0xff] %vm1989_vm0, %v1970_v52 }
 0x2e7   : > { %v1866_v53 = vpop.xlane.xlu0 %1865 }
 0x2e8   : > { %v1971_v54 = vadd.f32 %v2857_v16, %v1866_v53 }
 0x2ea   : > { %2036 = vst.msk [vmem:[%s2865_s23 + $0x170] sm:$0xff] %vm1989_vm0, %v1971_v54 }
 0x2eb   : > { %v1869_v55 = vpop.xlane.xlu1 %1868 }
 0x2ec   : > { %v1972_v56 = vadd.f32 %v2857_v16, %v1869_v55 }
 0x2ee   : > { %2037 = vst.msk [vmem:[%s2865_s23 + $0x178] sm:$0xff] %vm1989_vm0, %v1972_v56 }
 0x2ef   : > { %v1872_v57 = vpop.xlane.xlu0 %1871 }
 0x2f0   : > { %v1973_v58 = vadd.f32 %v2857_v16, %v1872_v57 }
 0x2f2   : > { %2038 = vst.msk [vmem:[%s2865_s23 + $0x180] sm:$0xff] %vm1989_vm0, %v1973_v58 }
 0x2f3   : > { %v1875_v59 = vpop.xlane.xlu1 %1874 }
 0x2f4   : > { %v1974_v61 = vadd.f32 %v2857_v16, %v1875_v59 }
 0x2f6   : > { %2039 = vst.msk [vmem:[%s2865_s23 + $0x188] sm:$0xff] %vm1989_vm0, %v1974_v61 }
 0x2f7   : > { %v1878_v62 = vpop.xlane.xlu0 %1877 }
 0x2f8   : > { %v1975_v63 = vadd.f32 %v2857_v16, %v1878_v62 }
 0x2fa   : > { %2040 = vst.msk [vmem:[%s2865_s23 + $0x190] sm:$0xff] %vm1989_vm0, %v1975_v63 }
 0x2fb   : > { %v1881_v0 = vpop.xlane.xlu1 %1880 }
 0x2fc   : > { %v1976_v1 = vadd.f32 %v2857_v16, %v1881_v0 }
 0x2fe   : > { %2041 = vst.msk [vmem:[%s2865_s23 + $0x198] sm:$0xff] %vm1989_vm0, %v1976_v1 }
 0x2ff   : > { %v1884_v2 = vpop.xlane.xlu0 %1883 }
 0x300   : > { %v1977_v3 = vadd.f32 %v2857_v16, %v1884_v2 }
 0x302   : > { %2042 = vst.msk [vmem:[%s2865_s23 + $0x1a0] sm:$0xff] %vm1989_vm0, %v1977_v3 }
 0x303   : > { %v1887_v4 = vpop.xlane.xlu1 %1886 }
 0x304   : > { %v1978_v5 = vadd.f32 %v2857_v16, %v1887_v4 }
 0x306   : > { %2043 = vst.msk [vmem:[%s2865_s23 + $0x1a8] sm:$0xff] %vm1989_vm0, %v1978_v5 }
 0x307   : > { %v1890_v7 = vpop.xlane.xlu0 %1889 }
 0x308   : > { %v1979_v8 = vadd.f32 %v2857_v16, %v1890_v7 }
 0x30a   : > { %2044 = vst.msk [vmem:[%s2865_s23 + $0x1b0] sm:$0xff] %vm1989_vm0, %v1979_v8 }
 0x30b   : > { %v1893_v9 = vpop.xlane.xlu1 %1892 }
 0x30c   : > { %v1980_v10 = vadd.f32 %v2857_v16, %v1893_v9 }
 0x30e   : > { %2045 = vst.msk [vmem:[%s2865_s23 + $0x1b8] sm:$0xff] %vm1989_vm0, %v1980_v10 }
 0x30f   : > { %v1896_v11 = vpop.xlane.xlu0 %1895 }
 0x310   : > { %v1981_v12 = vadd.f32 %v2857_v16, %v1896_v11 }
 0x312   : > { %2046 = vst.msk [vmem:[%s2865_s23 + $0x1c0] sm:$0xff] %vm1989_vm0, %v1981_v12 }
 0x313   : > { %v1899_v23 = vpop.xlane.xlu1 %1898 }
 0x314   : > { %v1982_v13 = vadd.f32 %v2857_v16, %v1899_v23 }
 0x316   : > { %2047 = vst.msk [vmem:[%s2865_s23 + $0x1c8] sm:$0xff] %vm1989_vm0, %v1982_v13 }
 0x317   : > { %v1902_v6 = vpop.xlane.xlu0 %1901 }
 0x318   : > { %v1983_v60 = vadd.f32 %v2857_v16, %v1902_v6 }
 0x31a   : > { %2048 = vst.msk [vmem:[%s2865_s23 + $0x1d0] sm:$0xff] %vm1989_vm0, %v1983_v60 }
 0x31b   : > { %v1905_v14 = vpop.xlane.xlu1 %1904 }
 0x31c   : > { %v1984_v26 = vadd.f32 %v2857_v16, %v1905_v14 }
 0x31e   : > { %2049 = vst.msk [vmem:[%s2865_s23 + $0x1d8] sm:$0xff] %vm1989_vm0, %v1984_v26 }
 0x31f   : > { %v1908_v15 = vpop.xlane.xlu0 %1907 }
 0x320   : > { %v1985_v17 = vadd.f32 %v2857_v16, %v1908_v15 }
 0x322   : > { %2050 = vst.msk [vmem:[%s2865_s23 + $0x1e0] sm:$0xff] %vm1989_vm0, %v1985_v17 }
 0x323   : > { %v1911_v18 = vpop.xlane.xlu1 %1910 }
 0x324   : > { %v1986_v35 = vadd.f32 %v2857_v16, %v1911_v18 }
 0x326   : > { %2051 = vst.msk [vmem:[%s2865_s23 + $0x1e8] sm:$0xff] %vm1989_vm0, %v1986_v35 }
 0x327   : > { %v1914_v36 = vpop.xlane.xlu0 %1913 }
 0x328   : > { %v1987_v19 = vadd.f32 %v2857_v16, %v1914_v36 }
 0x32a   : > { %2052 = vst.msk [vmem:[%s2865_s23 + $0x1f0] sm:$0xff] %vm1989_vm0, %v1987_v19 }
 0x32b   : > { %v1917_v21 = vpop.xlane.xlu1 %1916 }
 0x32c   : > { %v1988_v22 = vadd.f32 %v2857_v16, %v1917_v21 }
 0x32e   : > { %2053 = vst.msk [vmem:[%s2865_s23 + $0x1f8] sm:$0xff] %vm1989_vm0, %v1988_v22 }
 0x32f PF: > { %s19_s26 = sadd.s32 1, %s2394_s26  }
 0x330   : > { %p16_p4 = scmp.ge.s32.totalorder %s19_s26, 4  }
 0x332   :  { %18 = sbr.rel (!%p16_p4) target bundleno = 3 (0x3), region = 78 }

</bundles_post_ra>
